<compile_context>
chip_gen: v7x
topology: tpu7x:2x2x1
jax: 0.10.0
libtpu: 0.0.40
codegen_flags: <defaults>
</compile_context>

<pallas_src>
import numpy as np
import jax
import jax.numpy as jnp
from jax import lax
from jax.experimental import pallas as pl
from jax.experimental.pallas import tpu as pltpu

LANE = 128


def _make_aspp_kernel(H, W, Hp, Wp, H_out, W_out, Cin, Coutp, KH, KW,
                      padding, dilation):
    HWo = H_out * W_out

    def kernel(x_ref, w_ref, bias_ref, o_ref, xpad_ref, acc_ref):
        # x_ref    : (1, H, W, Cin)       bf16, un-padded NHWC tile (one image)
        # w_ref    : (1, KW, Cin, Coutp)  bf16, BN-scale-folded weights, tap row kh
        # bias_ref : (1, Coutp)           f32, folded BN bias (zero-padded)
        # o_ref    : (1, HWo, Coutp)      f32, lane-dense flattened output
        # xpad_ref : (Hp, Wp, Cin)        bf16 scratch, zero-padded image
        # acc_ref  : (HWo, Coutp)         f32 scratch accumulator
        kh = pl.program_id(1)

        @pl.when(kh == 0)
        def _():
            # Build the zero-padded image in VMEM (instead of a wrapper-side
            # jnp.pad that would cost an extra HBM pass) and clear the accumulator.
            xpad_ref[...] = jnp.zeros_like(xpad_ref)
            xpad_ref[padding:padding + H, padding:padding + W, :] = x_ref[0]
            acc_ref[...] = jnp.zeros_like(acc_ref)

        h0 = kh * dilation                      # dynamic row offset (scalar unit)
        for kw in range(KW):                    # static unroll, static W offsets
            w0 = kw * dilation
            # (H_out, W_out, Cin) window.  W_out is a multiple of 8, so merging
            # (H_out, W_out) -> H_out*W_out sublanes is tile-aligned (no retile).
            patch = xpad_ref[pl.ds(h0, H_out), w0:w0 + W_out, :]
            patch2d = patch.reshape(HWo, Cin)
            acc_ref[...] += jnp.dot(patch2d, w_ref[0, kw],
                                    preferred_element_type=jnp.float32)

        @pl.when(kh == KH - 1)
        def _():
            y = acc_ref[...] + bias_ref[...]            # fused BN bias
            o_ref[0] = jnp.maximum(y, 0.0).astype(o_ref.dtype)   # ReLU, full-lane stores

    return kernel


def aspp_forward(x_nchw, w_oihw, gamma, beta, running_mean, running_var,
                 *, padding, dilation, eps=1e-5):
    """Forward pass of _ASPPModule.  Inputs follow PyTorch conventions (NCHW/OIHW)."""
    N, Cin, H, W = x_nchw.shape
    Cout, Cin_w, KH, KW = w_oihw.shape
    assert Cin == Cin_w

    Hp, Wp = H + 2 * padding, W + 2 * padding
    H_out = Hp - dilation * (KH - 1)            # stride = 1
    W_out = Wp - dilation * (KW - 1)
    HWo = H_out * W_out
    Coutp = ((Cout + LANE - 1) // LANE) * LANE  # lane-dense output channels

    # Fold BatchNorm (inference form) into per-channel scale/bias; fold the scale
    # directly into the conv weights (one-time constant fold).
    scale = gamma / jnp.sqrt(running_var + eps)               # (Cout,)
    bias = beta - running_mean * scale                        # (Cout,)

    # NCHW -> NHWC activations, OIHW -> HWIO weights; bf16 operands for DMA/MXU.
    x = jnp.transpose(x_nchw, (0, 2, 3, 1)).astype(jnp.bfloat16)
    w = jnp.transpose(w_oihw, (2, 3, 1, 0)).astype(jnp.float32)
    w = (w * scale[None, None, None, :])
    w = jnp.pad(w, ((0, 0), (0, 0), (0, 0), (0, Coutp - Cout))).astype(jnp.bfloat16)
    bias_p = jnp.pad(bias.astype(jnp.float32), (0, Coutp - Cout)).reshape(1, Coutp)

    kernel = _make_aspp_kernel(H, W, Hp, Wp, H_out, W_out, Cin, Coutp, KH, KW,
                               padding, dilation)

    out_flat = pl.pallas_call(
        kernel,
        out_shape=jax.ShapeDtypeStruct((N, HWo, Coutp), jnp.float32),
        grid_spec=pltpu.PrefetchScalarGridSpec(
            num_scalar_prefetch=0,
            grid=(N, KH),                                  # reduction (kh) axis last
            in_specs=[
                # image block: resident across the kh reduction axis (one DMA per n)
                pl.BlockSpec((1, H, W, Cin), lambda n, kh: (n, 0, 0, 0)),
                # weights: stream one tap-row slice per step (no full-weight 2x buffer)
                pl.BlockSpec((1, KW, Cin, Coutp), lambda n, kh: (kh, 0, 0, 0)),
                pl.BlockSpec((1, Coutp), lambda n, kh: (0, 0)),
            ],
            out_specs=pl.BlockSpec((1, HWo, Coutp), lambda n, kh: (n, 0, 0)),
            scratch_shapes=[
                pltpu.VMEM((Hp, Wp, Cin), jnp.bfloat16),   # zero-padded image
                pltpu.VMEM((HWo, Coutp), jnp.float32),     # f32 accumulator
            ],
        ),
        compiler_params=pltpu.CompilerParams(
            dimension_semantics=("parallel", "arbitrary"),
            vmem_limit_bytes=32 * 1024 * 1024,
        ),
    )(x, w, bias_p)

    # Drop the lane padding, un-flatten spatial (free reshape), return NCHW.
    out = out_flat[:, :, :Cout].reshape(N, H_out, W_out, Cout)
    # TODO(synk): skip this transpose if the surrounding graph can consume NHWC
    # (it is a full extra HBM pass over the activations).
    return jnp.transpose(out, (0, 3, 1, 2))


def reference_forward(x_nchw, w_oihw, gamma, beta, running_mean, running_var,
                      *, padding, dilation, eps=1e-5):
    """Module semantics evaluated at the kernel's bf16 operand precision
    (f32 accumulation), so the comparison with the Pallas kernel is tight."""
    scale = gamma / jnp.sqrt(running_var + eps)
    bias = beta - running_mean * scale
    w_folded = (w_oihw.astype(jnp.float32) * scale[:, None, None, None]
                ).astype(jnp.bfloat16).astype(jnp.float32)
    x = x_nchw.astype(jnp.bfloat16).astype(jnp.float32)
    y = lax.conv_general_dilated(
        x, w_folded, window_strides=(1, 1),
        padding=[(padding, padding), (padding, padding)],
        rhs_dilation=(dilation, dilation),
        dimension_numbers=("NCHW", "OIHW", "NCHW"),
        precision=lax.Precision.HIGHEST)
    y = y + bias[None, :, None, None]
    return jnp.maximum(y, 0.0)


if __name__ == "__main__":
    # module config: _ASPPModule(inplanes=4, planes=8, kernel_size=3,
    #                            padding=2, dilation=2, BatchNorm=nn.BatchNorm2d)
    N, Cin, H, W = 2, 4, 16, 16
    Cout, K = 8, 3
    padding, dilation = 2, 2

    key = jax.random.PRNGKey(0)
    kx, kw_key = jax.random.split(key)

    x = jax.random.normal(kx, (N, Cin, H, W), dtype=jnp.float32)

    # kaiming_normal_ (fan_in, gain sqrt(2)) on the conv weight (OIHW), no bias
    fan_in = Cin * K * K
    std = float(np.sqrt(2.0 / fan_in))
    w = jax.random.normal(kw_key, (Cout, Cin, K, K), dtype=jnp.float32) * std

    # BatchNorm params as set by _init_weight: weight=1, bias=0; fresh running stats
    gamma = jnp.ones((Cout,), jnp.float32)
    beta = jnp.zeros((Cout,), jnp.float32)
    running_mean = jnp.zeros((Cout,), jnp.float32)
    running_var = jnp.ones((Cout,), jnp.float32)

    out = aspp_forward(x, w, gamma, beta, running_mean, running_var,
                       padding=padding, dilation=dilation)
    out = jax.block_until_ready(out)

    ref = reference_forward(x, w, gamma, beta, running_mean, running_var,
                            padding=padding, dilation=dilation)
    ref = jax.block_until_ready(ref)

    np.testing.assert_allclose(np.asarray(out), np.asarray(ref),
                               rtol=1e-4, atol=1e-4)
    print("KERNEL_OK")
</pallas_src>

<mosaic_0001>
module attributes {stable_mosaic.version = 11 : i64} {
  func.func @kernel(%arg0: i32, %arg1: i32, %arg2: memref<1x16x16x4xbf16, #tpu.memory_space<vmem>>, %arg3: memref<1x3x4x128xbf16, #tpu.memory_space<vmem>>, %arg4: memref<1x128xf32, #tpu.memory_space<vmem>>, %arg5: memref<1x256x128xf32, #tpu.memory_space<vmem>>, %arg6: memref<20x20x4xbf16, #tpu.memory_space<vmem>>, %arg7: memref<256x128xf32, #tpu.memory_space<vmem>>) attributes {dimension_semantics = [#tpu.dimension_semantics<parallel>, #tpu.dimension_semantics<arbitrary>], iteration_bounds = array<i64: 2, 3>, scalar_prefetch = 0 : i64, scratch_operands = 2 : i64, tpu.core_type = #tpu.core_type<tc>, window_params = [{transform_indices = @transform_0, window_bounds = array<i64: 1, 16, 16, 4>}, {transform_indices = @transform_1, window_bounds = array<i64: 1, 3, 4, 128>}, {pipeline_mode = #tpu.pipeline_mode<synchronous>, transform_indices = @transform_2, window_bounds = array<i64: 1, 128>}, {transform_indices = @transform_3, window_bounds = array<i64: 1, 256, 128>}]} {
    %c0_i32 = arith.constant 0 : i32
    %0 = arith.cmpi eq, %arg1, %c0_i32 : i32
    %1 = arith.extui %0 : i1 to i32
    %c0_i32_0 = arith.constant 0 : i32
    %2 = arith.cmpi ne, %1, %c0_i32_0 : i32
    scf.if %2 {
      %cst_31 = arith.constant 0.000000e+00 : bf16
      %34 = vector.broadcast %cst_31 : bf16 to vector<20x20x4xbf16>
      %c0_32 = arith.constant 0 : index
      %c0_33 = arith.constant 0 : index
      %c0_34 = arith.constant 0 : index
      %35 = vector.load %arg6[%c0_32, %c0_33, %c0_34] : memref<20x20x4xbf16, #tpu.memory_space<vmem>>, vector<20x20x4xbf16>
      tpu.vector_store %arg6[%c0_32, %c0_33, %c0_34], %34 {strides = array<i32>} : memref<20x20x4xbf16, #tpu.memory_space<vmem>>, vector<20x20x4xbf16>,
      %c0_35 = arith.constant 0 : index
      %c0_36 = arith.constant 0 : index
      %c0_37 = arith.constant 0 : index
      %c0_38 = arith.constant 0 : index
      %36 = vector.load %arg2[%c0_35, %c0_36, %c0_37, %c0_38] : memref<1x16x16x4xbf16, #tpu.memory_space<vmem>>, vector<1x16x16x4xbf16>
      %37 = vector.shape_cast %36 : vector<1x16x16x4xbf16> to vector<16x16x4xbf16>
      %c2_39 = arith.constant 2 : index
      %c2_40 = arith.constant 2 : index
      %c0_41 = arith.constant 0 : index
      %38 = vector.load %arg6[%c2_39, %c2_40, %c0_41] : memref<20x20x4xbf16, #tpu.memory_space<vmem>>, vector<16x16x4xbf16>
      tpu.vector_store %arg6[%c2_39, %c2_40, %c0_41], %37 {strides = array<i32>} : memref<20x20x4xbf16, #tpu.memory_space<vmem>>, vector<16x16x4xbf16>,
      %cst_42 = arith.constant 0.000000e+00 : f32
      %39 = vector.broadcast %cst_42 : f32 to vector<256x128xf32>
      %c0_43 = arith.constant 0 : index
      %c0_44 = arith.constant 0 : index
      %40 = vector.load %arg7[%c0_43, %c0_44] : memref<256x128xf32, #tpu.memory_space<vmem>>, vector<256x128xf32>
      tpu.vector_store %arg7[%c0_43, %c0_44], %39 {strides = array<i32>} : memref<256x128xf32, #tpu.memory_space<vmem>>, vector<256x128xf32>,
    } else {
    }
    %c2_i32 = arith.constant 2 : i32
    %3 = arith.muli %arg1, %c2_i32 : i32
    %4 = arith.index_cast %3 : i32 to index
    %c0 = arith.constant 0 : index
    %c0_1 = arith.constant 0 : index
    %5 = vector.load %arg6[%4, %c0, %c0_1] : memref<20x20x4xbf16, #tpu.memory_space<vmem>>, vector<16x16x4xbf16>
    %6 = vector.shape_cast %5 : vector<16x16x4xbf16> to vector<256x4xbf16>
    %c0_2 = arith.constant 0 : index
    %c0_3 = arith.constant 0 : index
    %7 = vector.load %arg7[%c0_2, %c0_3] : memref<256x128xf32, #tpu.memory_space<vmem>>, vector<256x128xf32>
    %c0_4 = arith.constant 0 : index
    %c0_5 = arith.constant 0 : index
    %c0_6 = arith.constant 0 : index
    %c0_7 = arith.constant 0 : index
    %8 = vector.load %arg3[%c0_4, %c0_5, %c0_6, %c0_7] : memref<1x3x4x128xbf16, #tpu.memory_space<vmem>>, vector<1x1x4x128xbf16>
    %9 = vector.shape_cast %8 : vector<1x1x4x128xbf16> to vector<4x128xbf16>
    %cst = arith.constant dense<0.000000e+00> : vector<256x128xf32>
    %10 = tpu.matmul %6, %9, %cst {dimension_numbers = #tpu.dot_dimension_numbers<[1], [0], [0], [1], [0, 0, 1, 1], [], []>} : vector<256x4xbf16>, vector<4x128xbf16>, vector<256x128xf32> -> vector<256x128xf32>
    %11 = arith.addf %7, %10 : vector<256x128xf32>
    %c0_8 = arith.constant 0 : index
    %c0_9 = arith.constant 0 : index
    %12 = vector.load %arg7[%c0_8, %c0_9] : memref<256x128xf32, #tpu.memory_space<vmem>>, vector<256x128xf32>
    tpu.vector_store %arg7[%c0_8, %c0_9], %11 {strides = array<i32>} : memref<256x128xf32, #tpu.memory_space<vmem>>, vector<256x128xf32>,
    %13 = arith.index_cast %3 : i32 to index
    %c2 = arith.constant 2 : index
    %c0_10 = arith.constant 0 : index
    %14 = vector.load %arg6[%13, %c2, %c0_10] : memref<20x20x4xbf16, #tpu.memory_space<vmem>>, vector<16x16x4xbf16>
    %15 = vector.shape_cast %14 : vector<16x16x4xbf16> to vector<256x4xbf16>
    %c0_11 = arith.constant 0 : index
    %c0_12 = arith.constant 0 : index
    %16 = vector.load %arg7[%c0_11, %c0_12] : memref<256x128xf32, #tpu.memory_space<vmem>>, vector<256x128xf32>
    %c0_13 = arith.constant 0 : index
    %c1 = arith.constant 1 : index
    %c0_14 = arith.constant 0 : index
    %c0_15 = arith.constant 0 : index
    %17 = vector.load %arg3[%c0_13, %c1, %c0_14, %c0_15] : memref<1x3x4x128xbf16, #tpu.memory_space<vmem>>, vector<1x1x4x128xbf16>
    %18 = vector.shape_cast %17 : vector<1x1x4x128xbf16> to vector<4x128xbf16>
    %cst_16 = arith.constant dense<0.000000e+00> : vector<256x128xf32>
    %19 = tpu.matmul %15, %18, %cst_16 {dimension_numbers = #tpu.dot_dimension_numbers<[1], [0], [0], [1], [0, 0, 1, 1], [], []>} : vector<256x4xbf16>, vector<4x128xbf16>, vector<256x128xf32> -> vector<256x128xf32>
    %20 = arith.addf %16, %19 : vector<256x128xf32>
    %c0_17 = arith.constant 0 : index
    %c0_18 = arith.constant 0 : index
    %21 = vector.load %arg7[%c0_17, %c0_18] : memref<256x128xf32, #tpu.memory_space<vmem>>, vector<256x128xf32>
    tpu.vector_store %arg7[%c0_17, %c0_18], %20 {strides = array<i32>} : memref<256x128xf32, #tpu.memory_space<vmem>>, vector<256x128xf32>,
    %22 = arith.index_cast %3 : i32 to index
    %c4 = arith.constant 4 : index
    %c0_19 = arith.constant 0 : index
    %23 = vector.load %arg6[%22, %c4, %c0_19] : memref<20x20x4xbf16, #tpu.memory_space<vmem>>, vector<16x16x4xbf16>
    %24 = vector.shape_cast %23 : vector<16x16x4xbf16> to vector<256x4xbf16>
    %c0_20 = arith.constant 0 : index
    %c0_21 = arith.constant 0 : index
    %25 = vector.load %arg7[%c0_20, %c0_21] : memref<256x128xf32, #tpu.memory_space<vmem>>, vector<256x128xf32>
    %c0_22 = arith.constant 0 : index
    %c2_23 = arith.constant 2 : index
    %c0_24 = arith.constant 0 : index
    %c0_25 = arith.constant 0 : index
    %26 = vector.load %arg3[%c0_22, %c2_23, %c0_24, %c0_25] : memref<1x3x4x128xbf16, #tpu.memory_space<vmem>>, vector<1x1x4x128xbf16>
    %27 = vector.shape_cast %26 : vector<1x1x4x128xbf16> to vector<4x128xbf16>
    %cst_26 = arith.constant dense<0.000000e+00> : vector<256x128xf32>
    %28 = tpu.matmul %24, %27, %cst_26 {dimension_numbers = #tpu.dot_dimension_numbers<[1], [0], [0], [1], [0, 0, 1, 1], [], []>} : vector<256x4xbf16>, vector<4x128xbf16>, vector<256x128xf32> -> vector<256x128xf32>
    %29 = arith.addf %25, %28 : vector<256x128xf32>
    %c0_27 = arith.constant 0 : index
    %c0_28 = arith.constant 0 : index
    %30 = vector.load %arg7[%c0_27, %c0_28] : memref<256x128xf32, #tpu.memory_space<vmem>>, vector<256x128xf32>
    tpu.vector_store %arg7[%c0_27, %c0_28], %29 {strides = array<i32>} : memref<256x128xf32, #tpu.memory_space<vmem>>, vector<256x128xf32>,
    %c2_i32_29 = arith.constant 2 : i32
    %31 = arith.cmpi eq, %arg1, %c2_i32_29 : i32
    %32 = arith.extui %31 : i1 to i32
    %c0_i32_30 = arith.constant 0 : i32
    %33 = arith.cmpi ne, %32, %c0_i32_30 : i32
    scf.if %33 {
      %c0_31 = arith.constant 0 : index
      %c0_32 = arith.constant 0 : index
      %34 = vector.load %arg7[%c0_31, %c0_32] : memref<256x128xf32, #tpu.memory_space<vmem>>, vector<256x128xf32>
      %c0_33 = arith.constant 0 : index
      %c0_34 = arith.constant 0 : index
      %35 = vector.load %arg4[%c0_33, %c0_34] : memref<1x128xf32, #tpu.memory_space<vmem>>, vector<1x128xf32>
      %36 = vector.broadcast %35 : vector<1x128xf32> to vector<256x128xf32>
      %37 = arith.addf %34, %36 : vector<256x128xf32>
      %cst_35 = arith.constant 0.000000e+00 : f32
      %38 = vector.broadcast %cst_35 : f32 to vector<256x128xf32>
      %39 = arith.maximumf %37, %38 : vector<256x128xf32>
      %c0_36 = arith.constant 0 : index
      %c0_37 = arith.constant 0 : index
      %c0_38 = arith.constant 0 : index
      %40 = vector.load %arg5[%c0_36, %c0_37, %c0_38] : memref<1x256x128xf32, #tpu.memory_space<vmem>>, vector<1x256x128xf32>
      %41 = vector.shape_cast %40 : vector<1x256x128xf32> to vector<256x128xf32>
      %42 = vector.shape_cast %39 : vector<256x128xf32> to vector<1x256x128xf32>
      tpu.vector_store %arg5[%c0_36, %c0_37, %c0_38], %42 {strides = array<i32>} : memref<1x256x128xf32, #tpu.memory_space<vmem>>, vector<1x256x128xf32>,
    } else {
    }
    return
  }
  func.func @transform_0(%arg0: i32, %arg1: i32) -> (i32, i32, i32, i32) {
    %c0_i32 = arith.constant 0 : i32
    %c0_i32_0 = arith.constant 0 : i32
    %c0_i32_1 = arith.constant 0 : i32
    %c0_i32_2 = arith.constant 0 : i32
    return %arg0, %c0_i32, %c0_i32_0, %c0_i32_1 : i32, i32, i32, i32
  }
  func.func @transform_1(%arg0: i32, %arg1: i32) -> (i32, i32, i32, i32) {
    %c0_i32 = arith.constant 0 : i32
    %c0_i32_0 = arith.constant 0 : i32
    %c0_i32_1 = arith.constant 0 : i32
    %c0_i32_2 = arith.constant 0 : i32
    return %arg1, %c0_i32, %c0_i32_0, %c0_i32_1 : i32, i32, i32, i32
  }
  func.func @transform_2(%arg0: i32, %arg1: i32) -> (i32, i32) {
    %c0_i32 = arith.constant 0 : i32
    %c0_i32_0 = arith.constant 0 : i32
    %c0_i32_1 = arith.constant 0 : i32
    return %c0_i32, %c0_i32_0 : i32, i32
  }
  func.func @transform_3(%arg0: i32, %arg1: i32) -> (i32, i32, i32) {
    %c0_i32 = arith.constant 0 : i32
    %c0_i32_0 = arith.constant 0 : i32
    %c0_i32_1 = arith.constant 0 : i32
    return %arg0, %c0_i32, %c0_i32_0 : i32, i32, i32
  }
}

</mosaic_0001>

<bundles_post_ra>
// kernel: tpu_custom_call.1
= control target key start
LH: loop header
LB: loop body
LE: loop exit
PB: predicated region body
PF: predicated region fallthrough
CT: control target
= control target key end

     0   :  { %8 = vsyncpa [#allocation5], 0  ;;  %s3791_s0 = inlined_call_operand.vmem [shape: bf16[2,16,16,4], index: 0, kind: input, shape index: {}]   ;;  %s3792_s1 = inlined_call_operand.vmem [shape: bf16[3,3,4,128], index: 1, kind: input, shape index: {}]   ;;  %s3793_s2 = inlined_call_operand.vmem [shape: f32[1,128], index: 2, kind: input, shape index: {}]   ;;  %s3794_s3 = inlined_call_operand.hbm [shape: f32[2,256,128], index: 3, kind: output, shape index: {}]  }
   0x1   :  { %10 = vsyncpa [#allocation5 + $0x1], 0  ;;  %s3068_s12 = smov 0   ;;  %s3070_s13 = smov 0  }
   0x2   :  { %s3072_s14 = smov 0   ;;  %s3074_s15 = smov 0  }
   0x3   :  { %s3076_s16 = smov 0   ;;  %s3078_s17 = smov 0  }
   0x4   :  { %s3080_s18 = smov 0   ;;  %s3082_s19 = smov 0  }
   0x5 LB: > { %s2351_s20 = sadd.s32 4294967295, %s3041_s19   ;;  %s2352_s21 = sadd.s32 4294967294, %s3041_s19   ;;  %s3041_s19 = sphi %s3082_s19, %s16_s19   ;;  %s3037_s18 = sphi %s3080_s18, %s3809_s18   ;;  %s3033_s17 = sphi %s3078_s17, %s3808_s17   ;;  %s3029_s16 = sphi %s3076_s16, %s3807_s16   ;;  %s3025_s15 = sphi %s3074_s15, %s3806_s15   ;;  %s3021_s14 = sphi %s3072_s14, %s3805_s14   ;;  %s3017_s13 = sphi %s3070_s13, %s3804_s13   ;;  %s3013_s12 = sphi %s3068_s12, %s3803_s12  }
   0x6   : > { %s25_s22 = sadd.s32 1, %s3033_s17  ;;  %s28_s23 = sadd.s32 1, %s3037_s18 }
   0x7   : > { %p26_p0 = scmp.ge.s32.totalorder %s25_s22, 3  ;;  %p118_p1 = scmp.ne.s32.totalorder %s3021_s14, %s3017_s13 }
   0x8   : > { %p119_p2 = scmp.eq.s32.totalorder %s2351_s20, 5  ;;  %p124_p4 = scmp.ne.s32.totalorder %s3017_s13, %s3013_s12 }
   0x9   : > { %s3811_s22 = smov (%p26_p0, %s25_s22), 0  ;;  %s3813_s23 = smov (!%p26_p0, %s28_s23), %s3037_s18 }
   0xa   : > { %p3117_p3 = por %p119_p2, %p118_p1  ;;  %p30_p5 = scmp.ge.s32.totalorder %s3813_s23, 2 }
   0xb   : > { %p125_p6 = scmp.eq.s32.totalorder %s2352_s21, 5  ;;  %p2355_p7 = scmp.ge.s32.totalorder %s3041_s19, 1 }
   0xc   : > { %p162_p8 = scmp.lt.s32.totalorder %s3041_s19, 7  ;;  %s3815_s23 = smov (%p30_p5, %s3813_s23), 0 }
   0xd   : > { %p3127_p9 = por %p125_p6, %p124_p4  ;;  %s105_s26 = ssub.s32 %s3037_s18, %s3815_s23 }
   0xe   : > { %p163_p10 = pnand %p2355_p7, %p162_p8  ;;  %s108_s27 = sadd.s32 1, %s3021_s14 }
   0xf   : > { %p106_p11 = scmp.eq.s32.totalorder %s105_s26, 0  ;;  %s188_s29 = sand.u32 (!%p163_p10), 1, %s3017_s13  }
  0x10   : > { %166 = sbr.rel (%p163_p10) target bundleno = 456 (0x1c8), region = 32  ;;  %p191_p12 = scmp.lt.s32.totalorder (!%p163_p10), %s3029_s16, 1 }
  0x11   : > { %s3135_s28 = scalar_select %p106_p11, %s3021_s14, %s108_s27  }
  0x12   : > { %s2356_s30 = sshll.u32 (!%p163_p10), %s188_s29, 8  ;;  %p196_p13 = scmp.lt.s32.totalorder (!%p163_p10), %s3025_s15, 2 }
  0x13   : > { %s3154_s26 = scalar_lea.vmem (!%p163_p10), [#allocation4], %s2356_s30  ;;  %p2360_p0 = scmp.ne.s32.totalorder (!%p163_p10), %s3025_s15, 0 }
  0x17   : > { %s192_s4 = scalar_select %p191_p12, %s3029_s16, 1 }
  0x18   : > { %s197_s5 = scalar_select %p196_p13, %s3025_s15, 2 }
  0x19   : > { %s2501_s6 = sshll.u32 %s192_s4, 7  ;;  %205 = sbr.rel (%p2360_p0) target bundleno = 97 (0x61), region = 36  ;;  %vm206_vm0 = vcmask (!%p2360_p0), 27648   ;;  %vm209_vm1 = vcmask (!%p2360_p0), 25600   ;;  %vm464_vm2 = vcmask (!%p2360_p0), 27649   ;;  %v3043_v1 = vmov (!%p2360_p0), 0  }
  0x1a   : > { %s3147_s9 = scalar_lea.vmem %s3791_s0, %s2501_s6  ;;  %s2855_s10 = smul.u32 6, %s197_s5  ;;  %214 = vst.msk [vmem:[#allocation2 + $0x18] sm:$0xf] (!%p2360_p0), %vm206_vm0, %v3043_v1  ;;  %207 = vst.msk [vmem:[#allocation2] sm:$0xf] (!%p2360_p0), %vm206_vm0, %v3043_v1  ;;  %vm332_vm3 = vcmask (!%p2360_p0), 1040384  }
  0x1b   : > { %v3158_v0 = vld [vmem:[%s3147_s9] sm:$0xf] (!%p2360_p0)  ;;  %208 = vst.msk [vmem:[#allocation2 + $0x4] sm:$0xf] (!%p2360_p0), %vm206_vm0, %v3043_v1  ;;  %211 = vst.msk [vmem:[#allocation2 + $0xc] sm:$0xf] (!%p2360_p0), %vm206_vm0, %v3043_v1 }
  0x1c   : > { %s3152_s21 = scalar_lea.vmem %s3792_s1, %s2855_s10  ;;  %212 = vst.msk [vmem:[#allocation2 + $0x10] sm:$0xf] (!%p2360_p0), %vm206_vm0, %v3043_v1  ;;  %215 = vst.msk [vmem:[#allocation2 + $0x1c] sm:$0xf] (!%p2360_p0), %vm206_vm0, %v3043_v1  ;;  %v335_v2 = vrot.slane (!%p2360_p0), %v3158_v0, 7  ;;  %vm333_vm4 = vcmask (!%p2360_p0), 1044484  }
  0x1d   : > { %217 = vst.msk [vmem:[#allocation2 + $0x24] sm:$0xf] (!%p2360_p0), %vm206_vm0, %v3043_v1  ;;  %218 = vst.msk [vmem:[#allocation2 + $0x28] sm:$0xf] (!%p2360_p0), %vm206_vm0, %v3043_v1  ;;  %v269_v3 = vld [vmem:[%s3147_s9 + $0x4] sm:$0xf] (!%p2360_p0) }
  0x1e   : > { %220 = vst.msk [vmem:[#allocation2 + $0x30] sm:$0xf] (!%p2360_p0), %vm206_vm0, %v3043_v1  ;;  %221 = vst.msk [vmem:[#allocation2 + $0x34] sm:$0xf] (!%p2360_p0), %vm206_vm0, %v3043_v1  ;;  %v337_v5 = vrot.slane (!%p2360_p0), %v269_v3, 7  ;;  %v336_v8 = vrot.slane (!%p2360_p0), %v335_v2, 4 }
  0x1f   : > { %223 = vst.msk [vmem:[#allocation2 + $0x3c] sm:$0xf] (!%p2360_p0), %vm206_vm0, %v3043_v1  ;;  %224 = vst.msk [vmem:[#allocation2 + $0x40] sm:$0xf] (!%p2360_p0), %vm206_vm0, %v3043_v1  ;;  %v270_v6 = vld [vmem:[%s3147_s9 + $0x8] sm:$0xf] (!%p2360_p0) }
  0x20   : > { %226 = vst.msk [vmem:[#allocation2 + $0x48] sm:$0xf] %vm206_vm0, %v3043_v1  ;;  %227 = vst.msk [vmem:[#allocation2 + $0x4c] sm:$0xf] %vm206_vm0, %v3043_v1  ;;  %v271_v7 = vld [vmem:[%s3147_s9 + $0xc] sm:$0xf] }
  0x21   : > { %229 = vst.msk [vmem:[#allocation2 + $0x54] sm:$0xf] %vm206_vm0, %v3043_v1  ;;  %230 = vst.msk [vmem:[#allocation2 + $0x58] sm:$0xf] %vm206_vm0, %v3043_v1  ;;  %vm467_vm6 = vcmask 24576   ;;  %v340_v9 = vrot.slane %v270_v6, 7 }
  0x22   : > { %232 = vst.msk [vmem:[#allocation2 + $0x60] sm:$0xf] %vm206_vm0, %v3043_v1  ;;  %233 = vst.msk [vmem:[#allocation2 + $0x64] sm:$0xf] %vm206_vm0, %v3043_v1  ;;  %v342_v10 = vrot.slane %v271_v7, 7  ;;  %v3044_v12 = vmov 0.0  }
  0x23   : > { %235 = vst.msk [vmem:[#allocation2 + $0x6c] sm:$0xf] %vm206_vm0, %v3043_v1  ;;  %236 = vst.msk [vmem:[#allocation2 + $0x70] sm:$0xf] %vm206_vm0, %v3043_v1  ;;  %v272_v11 = vld [vmem:[%s3147_s9 + $0x10] sm:$0xf] }
  0x24   : > { %238 = vst.msk [vmem:[#allocation2 + $0x78] sm:$0xf] %vm206_vm0, %v3043_v1  ;;  %239 = vst.msk [vmem:[#allocation2 + $0x7c] sm:$0xf] %vm206_vm0, %v3043_v1  ;;  %v339_v13 = vrot.slane %v337_v5, 4  ;;  %v345_v14 = vrot.slane %v272_v11, 7 }
  0x25   : > { %241 = vst.msk [vmem:[#allocation2 + $0x84] sm:$0xf] %vm206_vm0, %v3043_v1  ;;  %242 = vst.msk [vmem:[#allocation2 + $0x88] sm:$0xf] %vm206_vm0, %v3043_v1  ;;  %v273_v15 = vld [vmem:[%s3147_s9 + $0x14] sm:$0xf] }
  0x26   : > { %244 = vst.msk [vmem:[#allocation2 + $0x90] sm:$0xf] %vm206_vm0, %v3043_v1  ;;  %245 = vst.msk [vmem:[#allocation2 + $0x94] sm:$0xf] %vm206_vm0, %v3043_v1  ;;  %v274_v16 = vld [vmem:[%s3147_s9 + $0x18] sm:$0xf] }
  0x27   : > { %247 = vst.msk [vmem:[#allocation2 + $0x9c] sm:$0xf] %vm206_vm0, %v3043_v1  ;;  %248 = vst.msk [vmem:[#allocation2 + $0xa0] sm:$0xf] %vm206_vm0, %v3043_v1  ;;  %v341_v18 = vrot.slane %v340_v9, 4  ;;  %v344_v19 = vrot.slane %v342_v10, 4 }
  0x28   : > { %250 = vst.msk [vmem:[#allocation2 + $0xa8] sm:$0xf] %vm206_vm0, %v3043_v1  ;;  %251 = vst.msk [vmem:[#allocation2 + $0xac] sm:$0xf] %vm206_vm0, %v3043_v1  ;;  %v347_v20 = vrot.slane %v273_v15, 7  ;;  %v346_v22 = vrot.slane %v345_v14, 4 }
  0x29   : > { %253 = vst.msk [vmem:[#allocation2 + $0xb4] sm:$0xf] %vm206_vm0, %v3043_v1  ;;  %254 = vst.msk [vmem:[#allocation2 + $0xb8] sm:$0xf] %vm206_vm0, %v3043_v1  ;;  %v275_v21 = vld [vmem:[%s3147_s9 + $0x1c] sm:$0xf] }
  0x2a   : > { %256 = vst.msk [vmem:[#allocation2 + $0xc0] sm:$0xf] %vm206_vm0, %v3043_v1  ;;  %257 = vst.msk [vmem:[#allocation2 + $0xc4] sm:$0xf] %vm206_vm0, %v3043_v1  ;;  %v350_v23 = vrot.slane %v274_v16, 7  ;;  %v352_v24 = vrot.slane %v275_v21, 7 }
  0x2b   : > { %259 = vst.msk [vmem:[#allocation2 + $0xcc] sm:$0xf] %vm206_vm0, %v3043_v1  ;;  %260 = vst.msk [vmem:[#allocation2 + $0xd0] sm:$0xf] %vm206_vm0, %v3043_v1  ;;  %v276_v25 = vld [vmem:[%s3147_s9 + $0x20] sm:$0xf] }
  0x2c   : > { %262 = vst.msk [vmem:[#allocation2 + $0xd8] sm:$0xf] %vm206_vm0, %v3043_v1  ;;  %263 = vst.msk [vmem:[#allocation2 + $0xdc] sm:$0xf] %vm206_vm0, %v3043_v1  ;;  %v349_v27 = vrot.slane %v347_v20, 4  ;;  %v355_v28 = vrot.slane %v276_v25, 7 }
  0x2d   : > { %265 = vst.msk [vmem:[#allocation2 + $0xe4] sm:$0xf] %vm206_vm0, %v3043_v1  ;;  %266 = vst.msk [vmem:[#allocation2 + $0xe8] sm:$0xf] %vm206_vm0, %v3043_v1  ;;  %v277_v29 = vld [vmem:[%s3147_s9 + $0x24] sm:$0xf] }
  0x2e   : > { %216 = vst.msk [vmem:[#allocation2 + $0x20] sm:$0x3] %vm209_vm1, %v3043_v1  ;;  %210 = vst.msk [vmem:[#allocation2 + $0x8] sm:$0x3] %vm209_vm1, %v3043_v1  ;;  %v278_v30 = vld [vmem:[%s3147_s9 + $0x28] sm:$0xf] }
  0x2f   : > { %213 = vst.msk [vmem:[#allocation2 + $0x14] sm:$0x3] %vm209_vm1, %v3043_v1  ;;  %219 = vst.msk [vmem:[#allocation2 + $0x2c] sm:$0x3] %vm209_vm1, %v3043_v1  ;;  %v351_v32 = vrot.slane %v350_v23, 4  ;;  %v354_v33 = vrot.slane %v352_v24, 4 }
  0x30   : > { %222 = vst.msk [vmem:[#allocation2 + $0x38] sm:$0x3] %vm209_vm1, %v3043_v1  ;;  %225 = vst.msk [vmem:[#allocation2 + $0x44] sm:$0x3] %vm209_vm1, %v3043_v1  ;;  %v357_v34 = vrot.slane %v277_v29, 7  ;;  %v356_v36 = vrot.slane %v355_v28, 4 }
  0x31   : > { %228 = vst.msk [vmem:[#allocation2 + $0x50] sm:$0x3] %vm209_vm1, %v3043_v1  ;;  %231 = vst.msk [vmem:[#allocation2 + $0x5c] sm:$0x3] %vm209_vm1, %v3043_v1  ;;  %v279_v35 = vld [vmem:[%s3147_s9 + $0x2c] sm:$0xf] }
  0x32   : > { %234 = vst.msk [vmem:[#allocation2 + $0x68] sm:$0x3] %vm209_vm1, %v3043_v1  ;;  %237 = vst.msk [vmem:[#allocation2 + $0x74] sm:$0x3] %vm209_vm1, %v3043_v1  ;;  %v360_v37 = vrot.slane %v278_v30, 7  ;;  %v362_v38 = vrot.slane %v279_v35, 7 }
  0x33   : > { %240 = vst.msk [vmem:[#allocation2 + $0x80] sm:$0x3] %vm209_vm1, %v3043_v1  ;;  %243 = vst.msk [vmem:[#allocation2 + $0x8c] sm:$0x3] %vm209_vm1, %v3043_v1  ;;  %v280_v39 = vld [vmem:[%s3147_s9 + $0x30] sm:$0xf] }
  0x34   : > { %246 = vst.msk [vmem:[#allocation2 + $0x98] sm:$0x3] %vm209_vm1, %v3043_v1  ;;  %249 = vst.msk [vmem:[#allocation2 + $0xa4] sm:$0x3] %vm209_vm1, %v3043_v1  ;;  %v359_v41 = vrot.slane %v357_v34, 4  ;;  %v365_v42 = vrot.slane %v280_v39, 7 }
  0x35   : > { %252 = vst.msk [vmem:[#allocation2 + $0xb0] sm:$0x3] %vm209_vm1, %v3043_v1  ;;  %255 = vst.msk [vmem:[#allocation2 + $0xbc] sm:$0x3] %vm209_vm1, %v3043_v1  ;;  %v281_v43 = vld [vmem:[%s3147_s9 + $0x34] sm:$0xf] }
  0x36   : > { %258 = vst.msk [vmem:[#allocation2 + $0xc8] sm:$0x3] %vm209_vm1, %v3043_v1  ;;  %261 = vst.msk [vmem:[#allocation2 + $0xd4] sm:$0x3] %vm209_vm1, %v3043_v1  ;;  %v282_v44 = vld [vmem:[%s3147_s9 + $0x38] sm:$0xf] }
  0x37   : > { %264 = vst.msk [vmem:[#allocation2 + $0xe0] sm:$0x3] %vm209_vm1, %v3043_v1  ;;  %267 = vst.msk [vmem:[#allocation2 + $0xec] sm:$0x3] %vm209_vm1, %v3043_v1  ;;  %v361_v46 = vrot.slane %v360_v37, 4  ;;  %v364_v47 = vrot.slane %v362_v38, 4 }
  0x38   : > { %vm3222_vm5 = vmor %vm332_vm3, %vm333_vm4  ;;  %465 = vst.msk [vmem:[#allocation2 + $0x18] sm:$0xe] %vm464_vm2, %v335_v2  ;;  %v367_v48 = vrot.slane %v281_v43, 7  ;;  %v283_v49 = vld [vmem:[%s3147_s9 + $0x3c] sm:$0xf]  ;;  %v366_v50 = vrot.slane %v365_v42, 4 }
  0x39   : > { %514 = vst [vmem:[#allocation3] sm:$0xff] %v3044_v12  ;;  %515 = vst [vmem:[#allocation3 + $0x8] sm:$0xff] %v3044_v12  ;;  %v338_v17 = vsel %vm3222_vm5, %v336_v8, %v337_v5  ;;  %v343_v26 = vsel %vm3222_vm5, %v341_v18, %v342_v10  ;;  %v348_v31 = vsel %vm3222_vm5, %v346_v22, %v347_v20  ;;  %v370_v51 = vrot.slane %v282_v44, 7  ;;  %v284_v53 = vld [vmem:[%s3147_s9 + $0x40] sm:$0xf] }
  0x3a   : > { %516 = vst [vmem:[#allocation3 + $0x10] sm:$0xff] %v3044_v12  ;;  %517 = vst [vmem:[#allocation3 + $0x18] sm:$0xff] %v3044_v12  ;;  %v353_v40 = vsel %vm3222_vm5, %v351_v32, %v352_v24  ;;  %v358_v45 = vsel %vm3222_vm5, %v356_v36, %v357_v34  ;;  %v372_v52 = vrot.slane %v283_v49, 7  ;;  %v363_v54 = vsel %vm3222_vm5, %v361_v46, %v362_v38  ;;  %v285_v57 = vld [vmem:[%s3147_s9 + $0x44] sm:$0xf] }
  0x3b   : > { %518 = vst [vmem:[#allocation3 + $0x20] sm:$0xff] %v3044_v12  ;;  %519 = vst [vmem:[#allocation3 + $0x28] sm:$0xff] %v3044_v12  ;;  %v369_v55 = vrot.slane %v367_v48, 4  ;;  %v375_v56 = vrot.slane %v284_v53, 7  ;;  %v286_v58 = vld [vmem:[%s3147_s9 + $0x48] sm:$0xf]  ;;  %v368_v59 = vsel %vm3222_vm5, %v366_v50, %v367_v48 }
  0x3c   : > { %520 = vst [vmem:[#allocation3 + $0x30] sm:$0xff] %v3044_v12  ;;  %521 = vst [vmem:[#allocation3 + $0x38] sm:$0xff] %v3044_v12  ;;  %v371_v60 = vrot.slane %v370_v51, 4  ;;  %v374_v61 = vrot.slane %v372_v52, 4  ;;  %v377_v62 = vrot.slane %v285_v57, 7  ;;  %v380_v1 = vrot.slane %v286_v58, 7 }
  0x3d   : > { %522 = vst [vmem:[#allocation3 + $0x40] sm:$0xff] %v3044_v12  ;;  %523 = vst [vmem:[#allocation3 + $0x48] sm:$0xff] %v3044_v12  ;;  %v287_v63 = vld [vmem:[%s3147_s9 + $0x4c] sm:$0xf]  ;;  %v376_v0 = vrot.slane %v375_v56, 4 }
  0x3e   : > { %524 = vst [vmem:[#allocation3 + $0x50] sm:$0xff] %v3044_v12  ;;  %525 = vst [vmem:[#allocation3 + $0x58] sm:$0xff] %v3044_v12  ;;  %v382_v2 = vrot.slane %v287_v63, 7  ;;  %v288_v3 = vld [vmem:[%s3147_s9 + $0x50] sm:$0xf]  ;;  %v373_v5 = vsel %vm3222_vm5, %v371_v60, %v372_v52  ;;  %v379_v6 = vrot.slane %v377_v62, 4 }
  0x3f   : > { %526 = vst [vmem:[#allocation3 + $0x60] sm:$0xff] %v3044_v12  ;;  %527 = vst [vmem:[#allocation3 + $0x68] sm:$0xff] %v3044_v12  ;;  %v385_v7 = vrot.slane %v288_v3, 7  ;;  %v289_v8 = vld [vmem:[%s3147_s9 + $0x54] sm:$0xf]  ;;  %v378_v10 = vsel %vm3222_vm5, %v376_v0, %v377_v62  ;;  %v381_v11 = vrot.slane %v380_v1, 4 }
  0x40   : > { %528 = vst [vmem:[#allocation3 + $0x70] sm:$0xff] %v3044_v12  ;;  %529 = vst [vmem:[#allocation3 + $0x78] sm:$0xff] %v3044_v12  ;;  %v292_v18 = vld [vmem:[%s3147_s9 + $0x60] sm:$0xf]  ;;  %v293_v22 = vld [vmem:[%s3147_s9 + $0x64] sm:$0xf] }
  0x41   : > { %530 = vst [vmem:[#allocation3 + $0x80] sm:$0xff] %v3044_v12  ;;  %531 = vst [vmem:[#allocation3 + $0x88] sm:$0xff] %v3044_v12  ;;  %v386_v15 = vrot.slane %v385_v7, 4  ;;  %v395_v21 = vrot.slane %v292_v18, 7  ;;  %v296_v32 = vld [vmem:[%s3147_s9 + $0x70] sm:$0xf] }
  0x42   : > { %532 = vst [vmem:[#allocation3 + $0x90] sm:$0xff] %v3044_v12  ;;  %533 = vst [vmem:[#allocation3 + $0x98] sm:$0xff] %v3044_v12  ;;  %v405_v35 = vrot.slane %v296_v32, 7  ;;  %v297_v36 = vld [vmem:[%s3147_s9 + $0x74] sm:$0xf] }
  0x43   : > { %534 = vst [vmem:[#allocation3 + $0xa0] sm:$0xff] %v3044_v12  ;;  %535 = vst [vmem:[#allocation3 + $0xa8] sm:$0xff] %v3044_v12  ;;  %v396_v29 = vrot.slane %v395_v21, 4 }
  0x44   : > { %536 = vst [vmem:[#allocation3 + $0xb0] sm:$0xff] %v3044_v12  ;;  %537 = vst [vmem:[#allocation3 + $0xb8] sm:$0xff] %v3044_v12  ;;  %v406_v43 = vrot.slane %v405_v35, 4 }
  0x45   : > { %538 = vst [vmem:[#allocation3 + $0xc0] sm:$0xff] %v3044_v12  ;;  %539 = vst [vmem:[#allocation3 + $0xc8] sm:$0xff] %v3044_v12 }
  0x46   : > { %540 = vst [vmem:[#allocation3 + $0xd0] sm:$0xff] %v3044_v12  ;;  %541 = vst [vmem:[#allocation3 + $0xd8] sm:$0xff] %v3044_v12 }
  0x47   : > { %542 = vst [vmem:[#allocation3 + $0xe0] sm:$0xff] %v3044_v12  ;;  %543 = vst [vmem:[#allocation3 + $0xe8] sm:$0xff] %v3044_v12 }
  0x48   : > { %544 = vst [vmem:[#allocation3 + $0xf0] sm:$0xff] %v3044_v12  ;;  %545 = vst [vmem:[#allocation3 + $0xf8] sm:$0xff] %v3044_v12  ;;  %v384_v12 = vrot.slane %v382_v2, 4 }
  0x49   : > { %469 = vst.msk [vmem:[#allocation2 + $0x24] sm:$0xe] %vm464_vm2, %v340_v9  ;;  %472 = vst.msk [vmem:[#allocation2 + $0x30] sm:$0xe] %vm464_vm2, %v345_v14  ;;  %v290_v9 = vld [vmem:[%s3147_s9 + $0x58] sm:$0xf] }
  0x4a   : > { %466 = vst.msk [vmem:[#allocation2 + $0x1c] sm:$0xf] %vm206_vm0, %v338_v17  ;;  %470 = vst.msk [vmem:[#allocation2 + $0x28] sm:$0xf] %vm206_vm0, %v343_v26  ;;  %v291_v14 = vld [vmem:[%s3147_s9 + $0x5c] sm:$0xf] }
  0x4b   : > { %468 = vst.msk [vmem:[#allocation2 + $0x20] sm:$0x1] %vm467_vm6, %v339_v13  ;;  %471 = vst.msk [vmem:[#allocation2 + $0x2c] sm:$0x1] %vm467_vm6, %v344_v19  ;;  %v387_v13 = vrot.slane %v289_v8, 7  ;;  %v390_v16 = vrot.slane %v290_v9, 7  ;;  %v383_v19 = vsel %vm3222_vm5, %v381_v11, %v382_v2 }
  0x4c   : > { %475 = vst.msk [vmem:[#allocation2 + $0x3c] sm:$0xe] %vm464_vm2, %v350_v23  ;;  %478 = vst.msk [vmem:[#allocation2 + $0x48] sm:$0xe] %vm464_vm2, %v355_v28  ;;  %v392_v17 = vrot.slane %v291_v14, 7 }
  0x4d   : > { %473 = vst.msk [vmem:[#allocation2 + $0x34] sm:$0xf] %vm206_vm0, %v348_v31  ;;  %476 = vst.msk [vmem:[#allocation2 + $0x40] sm:$0xf] %vm206_vm0, %v353_v40  ;;  %v389_v20 = vrot.slane %v387_v13, 4  ;;  %v388_v24 = vsel %vm3222_vm5, %v386_v15, %v387_v13  ;;  %v391_v25 = vrot.slane %v390_v16, 4 }
  0x4e   : > { %474 = vst.msk [vmem:[#allocation2 + $0x38] sm:$0x1] %vm467_vm6, %v349_v27  ;;  %477 = vst.msk [vmem:[#allocation2 + $0x44] sm:$0x1] %vm467_vm6, %v354_v33  ;;  %v294_v23 = vld [vmem:[%s3147_s9 + $0x68] sm:$0xf] }
  0x4f   : > { %481 = vst.msk [vmem:[#allocation2 + $0x54] sm:$0xe] %vm464_vm2, %v360_v37  ;;  %484 = vst.msk [vmem:[#allocation2 + $0x60] sm:$0xe] %vm464_vm2, %v365_v42  ;;  %v394_v26 = vrot.slane %v392_v17, 4  ;;  %v397_v27 = vrot.slane %v293_v22, 7  ;;  %v393_v33 = vsel %vm3222_vm5, %v391_v25, %v392_v17 }
  0x50   : > { %479 = vst.msk [vmem:[#allocation2 + $0x4c] sm:$0xf] %vm206_vm0, %v358_v45  ;;  %482 = vst.msk [vmem:[#allocation2 + $0x58] sm:$0xf] %vm206_vm0, %v363_v54  ;;  %v295_v28 = vld [vmem:[%s3147_s9 + $0x6c] sm:$0xf] }
  0x51   : > { %480 = vst.msk [vmem:[#allocation2 + $0x50] sm:$0x1] %vm467_vm6, %v359_v41  ;;  %483 = vst.msk [vmem:[#allocation2 + $0x5c] sm:$0x1] %vm467_vm6, %v364_v47  ;;  %v400_v30 = vrot.slane %v294_v23, 7  ;;  %v402_v31 = vrot.slane %v295_v28, 7  ;;  %v398_v38 = vsel %vm3222_vm5, %v396_v29, %v397_v27 }
  0x52   : > { %487 = vst.msk [vmem:[#allocation2 + $0x6c] sm:$0xe] %vm464_vm2, %v370_v51  ;;  %490 = vst.msk [vmem:[#allocation2 + $0x78] sm:$0xe] %vm464_vm2, %v375_v56  ;;  %v399_v34 = vrot.slane %v397_v27, 4  ;;  %v407_v41 = vrot.slane %v297_v36, 7 }
  0x53   : > { %485 = vst.msk [vmem:[#allocation2 + $0x64] sm:$0xf] %vm206_vm0, %v368_v59  ;;  %488 = vst.msk [vmem:[#allocation2 + $0x70] sm:$0xf] %vm206_vm0, %v373_v5  ;;  %v298_v37 = vld [vmem:[%s3147_s9 + $0x78] sm:$0xf] }
  0x54   : > { %486 = vst.msk [vmem:[#allocation2 + $0x68] sm:$0x1] %vm467_vm6, %v369_v55  ;;  %489 = vst.msk [vmem:[#allocation2 + $0x74] sm:$0x1] %vm467_vm6, %v374_v61  ;;  %v401_v39 = vrot.slane %v400_v30, 4  ;;  %v404_v40 = vrot.slane %v402_v31, 4  ;;  %v408_v48 = vsel %vm3222_vm5, %v406_v43, %v407_v41 }
  0x55   : > { %493 = vst.msk [vmem:[#allocation2 + $0x84] sm:$0xe] %vm464_vm2, %v380_v1  ;;  %496 = vst.msk [vmem:[#allocation2 + $0x90] sm:$0xe] %vm464_vm2, %v385_v7  ;;  %v299_v42 = vld [vmem:[%s3147_s9 + $0x7c] sm:$0xf] }
  0x56   : > { %491 = vst.msk [vmem:[#allocation2 + $0x7c] sm:$0xf] %vm206_vm0, %v378_v10  ;;  %494 = vst.msk [vmem:[#allocation2 + $0x88] sm:$0xf] %vm206_vm0, %v383_v19  ;;  %v410_v44 = vrot.slane %v298_v37, 7  ;;  %v412_v45 = vrot.slane %v299_v42, 7  ;;  %v403_v46 = vsel %vm3222_vm5, %v401_v39, %v402_v31 }
  0x57   : > { %492 = vst.msk [vmem:[#allocation2 + $0x80] sm:$0x1] %vm467_vm6, %v379_v6  ;;  %495 = vst.msk [vmem:[#allocation2 + $0x8c] sm:$0x1] %vm467_vm6, %v384_v12  ;;  %v409_v47 = vrot.slane %v407_v41, 4 }
  0x58   : > { %499 = vst.msk [vmem:[#allocation2 + $0x9c] sm:$0xe] %vm464_vm2, %v390_v16  ;;  %502 = vst.msk [vmem:[#allocation2 + $0xa8] sm:$0xe] %vm464_vm2, %v395_v21  ;;  %v411_v49 = vrot.slane %v410_v44, 4  ;;  %v414_v50 = vrot.slane %v412_v45, 4 }
  0x59   : > { %497 = vst.msk [vmem:[#allocation2 + $0x94] sm:$0xf] %vm206_vm0, %v388_v24  ;;  %500 = vst.msk [vmem:[#allocation2 + $0xa0] sm:$0xf] %vm206_vm0, %v393_v33 }
  0x5a   : > { %498 = vst.msk [vmem:[#allocation2 + $0x98] sm:$0x1] %vm467_vm6, %v389_v20  ;;  %501 = vst.msk [vmem:[#allocation2 + $0xa4] sm:$0x1] %vm467_vm6, %v394_v26  ;;  %v413_v51 = vsel %vm3222_vm5, %v411_v49, %v412_v45 }
  0x5b   : > { %505 = vst.msk [vmem:[#allocation2 + $0xb4] sm:$0xe] %vm464_vm2, %v400_v30  ;;  %508 = vst.msk [vmem:[#allocation2 + $0xc0] sm:$0xe] %vm464_vm2, %v405_v35 }
  0x5c   : > { %503 = vst.msk [vmem:[#allocation2 + $0xac] sm:$0xf] %vm206_vm0, %v398_v38  ;;  %506 = vst.msk [vmem:[#allocation2 + $0xb8] sm:$0xf] %vm206_vm0, %v403_v46 }
  0x5d   : > { %504 = vst.msk [vmem:[#allocation2 + $0xb0] sm:$0x1] %vm467_vm6, %v399_v34  ;;  %507 = vst.msk [vmem:[#allocation2 + $0xbc] sm:$0x1] %vm467_vm6, %v404_v40 }
  0x5e   : > { %511 = vst.msk [vmem:[#allocation2 + $0xcc] sm:$0xe] %vm464_vm2, %v410_v44 }
  0x5f   : > { %509 = vst.msk [vmem:[#allocation2 + $0xc4] sm:$0xf] %vm206_vm0, %v408_v48  ;;  %512 = vst.msk [vmem:[#allocation2 + $0xd0] sm:$0xf] %vm206_vm0, %v413_v51 }
  0x60   : > { %510 = vst.msk [vmem:[#allocation2 + $0xc8] sm:$0x1] %vm467_vm6, %v409_v47  ;;  %513 = vst.msk [vmem:[#allocation2 + $0xd4] sm:$0x1] %vm467_vm6, %v414_v50 }
  0x61 PF: > { %v614_v52 = vld [vmem:[%s3152_s21] sm:$0x3]  ;;  %vm744_vm7 = vcmask 1041408   ;;  %s2502_s27 = smul.u32 24, %s3025_s15  ;;  %v2412_v54 = vld [vmem:[%s3152_s21 + $0x2] sm:$0x3] }
  0x62   : > { %2851 = vmatprep.subr.msk.bf16.mxu1 %vm744_vm7, %v614_v52  ;;  %v746_v53 = vsel %vm744_vm7, %v614_v52, 0  ;;  %vm1069_vm8 = vcmask 1042432   ;;  %vm1070_vm9 = vcmask 1046532   ;;  %vm695_vm10 = vcmask 31744   ;;  %2852 = vmatprep.subr.msk.bf16.mxu0 %vm744_vm7, %v2412_v54  ;;  %v2461_v56 = vld [vmem:[%s3152_s21 + $0x4] sm:$0x3] }
  0x63   : > { %2556 = vmatpush3.bf16.msra.mxu1 %v746_v53  ;;  %v1315_v4 = vsel %vm744_vm7, %v2412_v54, 0  ;;  %vm3343_vm11 = vmor %vm1069_vm8, %vm1070_vm9  ;;  %s3348_s30 = scalar_lea.vmem [#allocation2], %s2502_s27  ;;  %v1884_v7 = vsel %vm744_vm7, %v2461_v56, 0  ;;  %vm1639_vm12 = vcmask 1045508   ;;  %p2494_p1 = scmp.ne.s32.totalorder %s3025_s15, 2 }
  0x64   : > { %2853 = vmatprep.subr.msk.bf16.mxu1 %vm744_vm7, %v2412_v54  ;;  %2590 = vmatpush3.bf16.msra.mxu0 %v1315_v4  ;;  %vm3431_vm13 = vmor %vm744_vm7, %vm1639_vm12 }
  0x65   : > { %2854 = vmatprep.subr.msk.bf16.mxu0 %vm744_vm7, %v2461_v56 }
  0x67   : > { %v2931_v57 = vld [vmem:[%s3348_s30] sm:$0xff]   ;;  %v2932_v58 = vld [vmem:[%s3348_s30 + $0xc] sm:$0xff]   ;;  %v975_v61 = vld [vmem:[%s3348_s30 + $0x8] sm:$0x1] }
  0x68   : > { %2557 = vmatprep.mubr.msk.bf16.mxu1 %vm695_vm10, %v2931_v57  ;;  %v973_v59 = vld [vmem:[%s3348_s30] sm:$0xe]  ;;  %v974_v60 = vld [vmem:[%s3348_s30 + $0x4] sm:$0xf]  ;;  %v1077_v0 = vrot.slane %v975_v61, 5  ;;  %v2933_v2 = vld [vmem:[%s3348_s30 + $0x18] sm:$0xff]  }
  0x69   : > { %2558 = vmatmul.mubr.msk.bf16.vlgmr.msra.gmra.mrb[0].mxu1 %vm695_vm10, %v2932_v58  ;;  %v2396_v62 = vrot.slane %v973_v59, 9  ;;  %v1074_v63 = vrot.slane %v974_v60, 5  ;;  %v976_v1 = vld [vmem:[%s3348_s30 + $0xc] sm:$0xe]  ;;  %v977_v3 = vld [vmem:[%s3348_s30 + $0x10] sm:$0xf] }
  0x6a   : > { %2658 = vmatpush3.bf16.msra.mxu1 %v1315_v4  ;;  %v978_v5 = vld [vmem:[%s3348_s30 + $0x14] sm:$0x1]  ;;  %v2397_v6 = vrot.slane %v976_v1, 9  ;;  %v1081_v10 = vrot.slane %v977_v3, 5  ;;  %2561 = vmatprep.mubr.msk.bf16.mxu1 %vm695_vm10, %v2933_v2  ;;  %v2934_v12 = vld [vmem:[%s3348_s30 + $0x24] sm:$0xff]   ;;  %v2936_v45 = vld [vmem:[%s3348_s30 + $0x3c] sm:$0xff]  }
  0x6b   : > { %v1075_v8 = vsel %vm3343_vm11, %v2396_v62, %v1074_v63  ;;  %v1076_v9 = vrot.slane %v1074_v63, 4  ;;  %v1084_v11 = vrot.slane %v978_v5, 5  ;;  %v979_v16 = vld [vmem:[%s3348_s30 + $0x18] sm:$0xe]  ;;  %v980_v17 = vld [vmem:[%s3348_s30 + $0x1c] sm:$0xf] }
  0x6c   : > { %v1082_v14 = vsel %vm3343_vm11, %v2397_v6, %v1081_v10  ;;  %v1083_v15 = vrot.slane %v1081_v10, 4  ;;  %v2935_v18 = vld [vmem:[%s3348_s30 + $0x30] sm:$0xff]   ;;  %v981_v20 = vld [vmem:[%s3348_s30 + $0x20] sm:$0x1]  ;;  %v2398_v21 = vrot.slane %v979_v16, 9  ;;  %v1088_v22 = vrot.slane %v980_v17, 5 }
  0x6d   : > { %v1078_v13 = vsel %vm3343_vm11, %v1076_v9, %v1077_v0  ;;  %v982_v23 = vld [vmem:[%s3348_s30 + $0x24] sm:$0xe]  ;;  %v1091_v25 = vrot.slane %v981_v20, 5  ;;  %v983_v26 = vld [vmem:[%s3348_s30 + $0x28] sm:$0xf] }
  0x6e   : > { %v2413_v19 = vcombine.low %v1075_v8, %v1078_v13  ;;  %v1085_v24 = vsel %vm3343_vm11, %v1083_v15, %v1084_v11  ;;  %v984_v27 = vld [vmem:[%s3348_s30 + $0x2c] sm:$0x1]  ;;  %v2399_v28 = vrot.slane %v982_v23, 9  ;;  %v1089_v30 = vsel %vm3343_vm11, %v2398_v21, %v1088_v22  ;;  %v985_v36 = vld [vmem:[%s3348_s30 + $0x30] sm:$0xe]  ;;  %v2938_v13 = vld [vmem:[%s3348_s30 + $0x54] sm:$0xff]  }
  0x6f   : > { %v2414_v29 = vcombine.low %v1082_v14, %v1085_v24  ;;  %v1090_v31 = vrot.slane %v1088_v22, 4  ;;  %v1095_v32 = vrot.slane %v983_v26, 5  ;;  %v1098_v33 = vrot.slane %v984_v27, 5  ;;  %v986_v37 = vld [vmem:[%s3348_s30 + $0x34] sm:$0xf]  ;;  %v2937_v54 = vld [vmem:[%s3348_s30 + $0x48] sm:$0xff]  }
  0x70   : > { %2591 = vmatprep.mubr.msk.bf16.mxu0 %vm695_vm10, %v2413_v19  ;;  %v987_v40 = vld [vmem:[%s3348_s30 + $0x38] sm:$0x1]  ;;  %v2400_v41 = vrot.slane %v985_v36, 9  ;;  %v1102_v42 = vrot.slane %v986_v37, 5  ;;  %v988_v43 = vld [vmem:[%s3348_s30 + $0x3c] sm:$0xe] }
  0x71   : > { %2562 = vmatmul.mubr.msk.bf16.gmra.mrb[4].mxu1 %vm695_vm10, %v2934_v12  ;;  %2592 = vmatmul.mubr.msk.bf16.vlgmr.msra.gmra.mrb[0].mxu0 %vm695_vm10, %v2414_v29  ;;  %v1092_v34 = vsel %vm3343_vm11, %v1090_v31, %v1091_v25  ;;  %v1097_v35 = vrot.slane %v1095_v32, 4  ;;  %v1096_v39 = vsel %vm3343_vm11, %v2399_v28, %v1095_v32  ;;  %v1105_v46 = vrot.slane %v987_v40, 5  ;;  %v989_v47 = vld [vmem:[%s3348_s30 + $0x40] sm:$0xf]  ;;  %v990_v48 = vld [vmem:[%s3348_s30 + $0x44] sm:$0x1] }
  0x72   : > { %2565 = vmatprep.mubr.msk.bf16.mxu1 %vm695_vm10, %v2935_v18  ;;  %2624 = vmatpush3.bf16.msra.mxu0 %v1884_v7  ;;  %v2415_v38 = vcombine.low %v1089_v30, %v1092_v34  ;;  %v1103_v49 = vsel %vm3343_vm11, %v2400_v41, %v1102_v42  ;;  %v1104_v50 = vrot.slane %v1102_v42, 4  ;;  %v1109_v51 = vrot.slane %v989_v47, 5  ;;  %v991_v58 = vld [vmem:[%s3348_s30 + $0x48] sm:$0xe]  ;;  %v992_v59 = vld [vmem:[%s3348_s30 + $0x4c] sm:$0xf] }
  0x73   : > { %v1099_v44 = vsel %vm3343_vm11, %v1097_v35, %v1098_v33  ;;  %v2401_v53 = vrot.slane %v988_v43, 9  ;;  %v1112_v57 = vrot.slane %v990_v48, 5  ;;  %v993_v61 = vld [vmem:[%s3348_s30 + $0x50] sm:$0x1]  ;;  %v2402_v62 = vrot.slane %v991_v58, 9  ;;  %v2939_v20 = vld [vmem:[%s3348_s30 + $0x60] sm:$0xff]  }
  0x74   : > { %2595 = vmatprep.mubr.msk.bf16.mxu0 %vm695_vm10, %v2415_v38  ;;  %v2416_v52 = vcombine.low %v1096_v39, %v1099_v44  ;;  %v1106_v4 = vsel %vm3343_vm11, %v1104_v50, %v1105_v46  ;;  %v1111_v56 = vrot.slane %v1109_v51, 4  ;;  %v1116_v63 = vrot.slane %v992_v59, 5  ;;  %v994_v1 = vld [vmem:[%s3348_s30 + $0x54] sm:$0xe]  ;;  %v995_v2 = vld [vmem:[%s3348_s30 + $0x58] sm:$0xf] }
  0x75   : > { %v2417_v60 = vcombine.low %v1103_v49, %v1106_v4  ;;  %v1119_v0 = vrot.slane %v993_v61, 5  ;;  %v1123_v5 = vrot.slane %v995_v2, 5  ;;  %v1110_v6 = vsel %vm3343_vm11, %v2401_v53, %v1109_v51  ;;  %v996_v8 = vld [vmem:[%s3348_s30 + $0x5c] sm:$0x1]  ;;  %v1542_v11 = vld [vmem:[%s3348_s30] sm:$0xc] }
  0x76   : > { %v1118_v3 = vrot.slane %v1116_v63, 4  ;;  %v1113_v7 = vsel %vm3343_vm11, %v1111_v56, %v1112_v57  ;;  %v1117_v9 = vsel %vm3343_vm11, %v2402_v62, %v1116_v63  ;;  %v1543_v12 = vld [vmem:[%s3348_s30 + $0x4] sm:$0xf]  ;;  %v2403_v14 = vrot.slane %v994_v1, 9  ;;  %v1544_v15 = vld [vmem:[%s3348_s30 + $0x8] sm:$0x3] }
  0x77   : > { %v1643_v16 = vrot.slane %v1543_v12, 6  ;;  %v2418_v17 = vcombine.low %v1110_v6, %v1113_v7  ;;  %v1125_v18 = vrot.slane %v1123_v5, 4  ;;  %v1126_v19 = vrot.slane %v996_v8, 5  ;;  %v1546_v23 = vld [vmem:[%s3348_s30 + $0x10] sm:$0xf]  ;;  %v2941_v40 = vld [vmem:[%s3348_s30 + $0x78] sm:$0xff]  }
  0x78   : > { %v1120_v10 = vsel %vm3343_vm11, %v1118_v3, %v1119_v0  ;;  %v2445_v21 = vrot.slane %v1542_v11, 10  ;;  %v1646_v25 = vrot.slane %v1544_v15, 6  ;;  %v1549_v27 = vld [vmem:[%s3348_s30 + $0x1c] sm:$0xf]  ;;  %v1545_v28 = vld [vmem:[%s3348_s30 + $0xc] sm:$0xc]  ;;  %v1124_v29 = vsel %vm3343_vm11, %v2403_v14, %v1123_v5 }
  0x79   : > { %2566 = vmatmul.mubr.msk.bf16.gmra.mrb[8].mxu1 %vm695_vm10, %v2936_v45  ;;  %2596 = vmatmul.mubr.msk.bf16.gmra.mrb[4].mxu0 %vm695_vm10, %v2416_v52  ;;  %v2419_v22 = vcombine.low %v1117_v9, %v1120_v10  ;;  %v1645_v24 = vrot.slane %v1643_v16, 4  ;;  %v1127_v30 = vsel %vm3343_vm11, %v1125_v18, %v1126_v19  ;;  %v1547_v31 = vld [vmem:[%s3348_s30 + $0x14] sm:$0x3]  ;;  %v1650_v32 = vrot.slane %v1546_v23, 6  ;;  %v1548_v33 = vld [vmem:[%s3348_s30 + $0x18] sm:$0xc] }
  0x7a   : > { %2569 = vmatprep.mubr.msk.bf16.mxu1 %vm695_vm10, %v2937_v54  ;;  %2599 = vmatprep.mubr.msk.bf16.mxu0 %vm695_vm10, %v2417_v60  ;;  %v2940_v34 = vld [vmem:[%s3348_s30 + $0x6c] sm:$0xff]   ;;  %v1644_v35 = vsel %vm3431_vm13, %v2445_v21, %v1643_v16  ;;  %v1657_v37 = vrot.slane %v1549_v27, 6  ;;  %v1550_v38 = vld [vmem:[%s3348_s30 + $0x20] sm:$0x3]  ;;  %v2420_v39 = vcombine.low %v1124_v29, %v1127_v30  ;;  %v2446_v42 = vrot.slane %v1545_v28, 10  ;;  %v2942_v58 = vld [vmem:[%s3348_s30 + $0x84] sm:$0xff]  }
  0x7b   : > { %v1647_v36 = vsel %vm3431_vm13, %v1645_v24, %v1646_v25  ;;  %v1652_v43 = vrot.slane %v1650_v32, 4  ;;  %v1653_v44 = vrot.slane %v1547_v31, 6  ;;  %v1552_v45 = vld [vmem:[%s3348_s30 + $0x28] sm:$0xf]  ;;  %v2447_v46 = vrot.slane %v1548_v33, 10  ;;  %v2943_v1 = vld [vmem:[%s3348_s30 + $0x90] sm:$0xff]  }
  0x7c   : > { %v2462_v41 = vcombine.low %v1644_v35, %v1647_v36  ;;  %v1659_v47 = vrot.slane %v1657_v37, 4  ;;  %v1660_v48 = vrot.slane %v1550_v38, 6  ;;  %v1555_v49 = vld [vmem:[%s3348_s30 + $0x34] sm:$0xf]  ;;  %v1664_v50 = vrot.slane %v1552_v45, 6  ;;  %v2944_v24 = vld [vmem:[%s3348_s30 + $0x9c] sm:$0xff]  }
  0x7d   : > { %v1651_v51 = vsel %vm3431_vm13, %v2446_v42, %v1650_v32  ;;  %v1654_v52 = vsel %vm3431_vm13, %v1652_v43, %v1653_v44  ;;  %v1551_v53 = vld [vmem:[%s3348_s30 + $0x24] sm:$0xc]  ;;  %v1553_v54 = vld [vmem:[%s3348_s30 + $0x2c] sm:$0x3]  ;;  %v1658_v4 = vsel %vm3431_vm13, %v2447_v46, %v1657_v37  ;;  %v1671_v57 = vrot.slane %v1555_v49, 6 }
  0x7e   : > { %v1661_v56 = vsel %vm3431_vm13, %v1659_v47, %v1660_v48  ;;  %v1554_v59 = vld [vmem:[%s3348_s30 + $0x30] sm:$0xc]  ;;  %v1556_v60 = vld [vmem:[%s3348_s30 + $0x38] sm:$0x3]  ;;  %v2463_v61 = vcombine.low %v1651_v51, %v1654_v52  ;;  %v2448_v62 = vrot.slane %v1551_v53, 10  ;;  %v1666_v63 = vrot.slane %v1664_v50, 4 }
  0x7f   : > { %v1667_v0 = vrot.slane %v1553_v54, 6  ;;  %v2464_v2 = vcombine.low %v1658_v4, %v1661_v56  ;;  %v1558_v3 = vld [vmem:[%s3348_s30 + $0x40] sm:$0xf]  ;;  %v1561_v5 = vld [vmem:[%s3348_s30 + $0x4c] sm:$0xf]  ;;  %v2449_v6 = vrot.slane %v1554_v59, 10 }
  0x80   : > { %v1673_v7 = vrot.slane %v1671_v57, 4  ;;  %v1674_v8 = vrot.slane %v1556_v60, 6  ;;  %v998_v9 = vld [vmem:[%s3348_s30 + $0x64] sm:$0xf]  ;;  %v1665_v10 = vsel %vm3431_vm13, %v2448_v62, %v1664_v50  ;;  %v1557_v12 = vld [vmem:[%s3348_s30 + $0x3c] sm:$0xc] }
  0x81   : > { %2570 = vmatmul.mubr.msk.bf16.gmra.mrb[12].mxu1 %vm695_vm10, %v2938_v13  ;;  %2600 = vmatmul.mubr.msk.bf16.gmra.mrb[8].mxu0 %vm695_vm10, %v2418_v17  ;;  %v1668_v11 = vsel %vm3431_vm13, %v1666_v63, %v1667_v0  ;;  %v1559_v13 = vld [vmem:[%s3348_s30 + $0x44] sm:$0x3]  ;;  %v1678_v14 = vrot.slane %v1558_v3, 6  ;;  %v1685_v15 = vrot.slane %v1561_v5, 6  ;;  %v1560_v16 = vld [vmem:[%s3348_s30 + $0x48] sm:$0xc]  ;;  %v1672_v19 = vsel %vm3431_vm13, %v2449_v6, %v1671_v57 }
  0x82   : > { %2573 = vmatprep.mubr.msk.bf16.mxu1 %vm695_vm10, %v2939_v20  ;;  %2603 = vmatprep.mubr.msk.bf16.mxu0 %vm695_vm10, %v2419_v22  ;;  %v1562_v17 = vld [vmem:[%s3348_s30 + $0x50] sm:$0x3]  ;;  %v1130_v18 = vrot.slane %v998_v9, 5  ;;  %v1675_v20 = vsel %vm3431_vm13, %v1673_v7, %v1674_v8  ;;  %v997_v21 = vld [vmem:[%s3348_s30 + $0x60] sm:$0xe]  ;;  %v2465_v23 = vcombine.low %v1665_v10, %v1668_v11  ;;  %v2450_v25 = vrot.slane %v1557_v12, 10 }
  0x83   : > { %v999_v22 = vld [vmem:[%s3348_s30 + $0x68] sm:$0x1]  ;;  %v1681_v27 = vrot.slane %v1559_v13, 6  ;;  %v1680_v29 = vrot.slane %v1678_v14, 4  ;;  %v2451_v30 = vrot.slane %v1560_v16, 10  ;;  %v1687_v31 = vrot.slane %v1685_v15, 4 }
  0x84   : > { %v2945_v28 = vld [vmem:[%s3348_s30 + $0xa8] sm:$0xff]   ;;  %v1688_v32 = vrot.slane %v1562_v17, 6  ;;  %v1564_v33 = vld [vmem:[%s3348_s30 + $0x58] sm:$0xf]  ;;  %v2404_v35 = vrot.slane %v997_v21, 9  ;;  %v1132_v36 = vrot.slane %v1130_v18, 4 }
  0x85   : > { %v1133_v37 = vrot.slane %v999_v22, 5  ;;  %v1001_v38 = vld [vmem:[%s3348_s30 + $0x70] sm:$0xf]  ;;  %v1692_v42 = vrot.slane %v1564_v33, 6  ;;  %v1567_v43 = vld [vmem:[%s3348_s30 + $0x64] sm:$0xf]  ;;  %v1682_v44 = vsel %vm3431_vm13, %v1680_v29, %v1681_v27  ;;  %v1686_v45 = vsel %vm3431_vm13, %v2451_v30, %v1685_v15 }
  0x86   : > { %v1689_v46 = vsel %vm3431_vm13, %v1687_v31, %v1688_v32  ;;  %v1565_v47 = vld [vmem:[%s3348_s30 + $0x5c] sm:$0x3]  ;;  %v1000_v48 = vld [vmem:[%s3348_s30 + $0x6c] sm:$0xe]  ;;  %v1137_v49 = vrot.slane %v1001_v38, 5  ;;  %v2946_v50 = vld [vmem:[%s3348_s30 + $0xb4] sm:$0xff]   ;;  %v1131_v51 = vsel %vm3343_vm11, %v2404_v35, %v1130_v18 }
  0x87   : > { %v1134_v52 = vsel %vm3343_vm11, %v1132_v36, %v1133_v37  ;;  %v1002_v53 = vld [vmem:[%s3348_s30 + $0x74] sm:$0x1]  ;;  %v1566_v54 = vld [vmem:[%s3348_s30 + $0x60] sm:$0xc]  ;;  %v1699_v57 = vrot.slane %v1567_v43, 6  ;;  %v1694_v62 = vrot.slane %v1692_v42, 4 }
  0x88   : > { %v1005_v59 = vld [vmem:[%s3348_s30 + $0x80] sm:$0x1]  ;;  %v1695_v63 = vrot.slane %v1565_v47, 6  ;;  %v1568_v0 = vld [vmem:[%s3348_s30 + $0x68] sm:$0x3]  ;;  %v2405_v3 = vrot.slane %v1000_v48, 9 }
  0x89   : > { %2574 = vmatmul.mubr.msk.bf16.gmra.mrb[16].mxu1 %vm695_vm10, %v2940_v34  ;;  %2604 = vmatmul.mubr.msk.bf16.gmra.mrb[12].mxu0 %vm695_vm10, %v2420_v39  ;;  %v2466_v34 = vcombine.low %v1672_v19, %v1675_v20  ;;  %v1004_v39 = vld [vmem:[%s3348_s30 + $0x7c] sm:$0xf]  ;;  %v1139_v5 = vrot.slane %v1137_v49, 4  ;;  %v1140_v6 = vrot.slane %v1002_v53, 5  ;;  %v2453_v7 = vrot.slane %v1566_v54, 10 }
  0x8a   : > { %2577 = vmatprep.mubr.msk.bf16.mxu1 %vm695_vm10, %v2941_v40  ;;  %2625 = vmatprep.mubr.msk.bf16.mxu0 %vm695_vm10, %v2462_v41  ;;  %v1679_v40 = vsel %vm3431_vm13, %v2450_v25, %v1678_v14  ;;  %v1563_v41 = vld [vmem:[%s3348_s30 + $0x54] sm:$0xc]  ;;  %v1144_v4 = vrot.slane %v1004_v39, 5  ;;  %v1147_v10 = vrot.slane %v1005_v59, 5  ;;  %v1007_v11 = vld [vmem:[%s3348_s30 + $0x88] sm:$0xf]  ;;  %v1696_v19 = vsel %vm3431_vm13, %v1694_v62, %v1695_v63 }
  0x8b   : > { %v2452_v56 = vrot.slane %v1563_v41, 10  ;;  %v2467_v60 = vcombine.low %v1679_v40, %v1682_v44  ;;  %v1701_v12 = vrot.slane %v1699_v57, 4  ;;  %v1702_v13 = vrot.slane %v1568_v0, 6  ;;  %v1010_v15 = vld [vmem:[%s3348_s30 + $0x94] sm:$0xf] }
  0x8c   : > { %v1146_v9 = vrot.slane %v1144_v4, 4  ;;  %v1569_v17 = vld [vmem:[%s3348_s30 + $0x6c] sm:$0xc]  ;;  %v1573_v18 = vld [vmem:[%s3348_s30 + $0x7c] sm:$0xf]  ;;  %v1138_v20 = vsel %vm3343_vm11, %v2405_v3, %v1137_v49  ;;  %v1141_v21 = vsel %vm3343_vm11, %v1139_v5, %v1140_v6  ;;  %v1700_v25 = vsel %vm3431_vm13, %v2453_v7, %v1699_v57 }
  0x8d   : > { %v1693_v16 = vsel %vm3431_vm13, %v2452_v56, %v1692_v42  ;;  %v1571_v22 = vld [vmem:[%s3348_s30 + $0x74] sm:$0x3]  ;;  %v1008_v29 = vld [vmem:[%s3348_s30 + $0x8c] sm:$0x1]  ;;  %v1009_v30 = vld [vmem:[%s3348_s30 + $0x90] sm:$0xe]  ;;  %v1703_v32 = vsel %vm3431_vm13, %v1701_v12, %v1702_v13  ;;  %v2422_v38 = vcombine.low %v1138_v20, %v1141_v21 }
  0x8e   : > { %v1158_v31 = vrot.slane %v1010_v15, 5  ;;  %v2454_v33 = vrot.slane %v1569_v17, 10  ;;  %v1713_v35 = vrot.slane %v1573_v18, 6  ;;  %v1011_v36 = vld [vmem:[%s3348_s30 + $0x98] sm:$0x1]  ;;  %v2469_v37 = vcombine.low %v1693_v16, %v1696_v19 }
  0x8f   : > { %v1709_v39 = vrot.slane %v1571_v22, 6  ;;  %v1572_v41 = vld [vmem:[%s3348_s30 + $0x78] sm:$0xc]  ;;  %v1574_v42 = vld [vmem:[%s3348_s30 + $0x80] sm:$0x3]  ;;  %v2470_v47 = vcombine.low %v1700_v25, %v1703_v32  ;;  %v1161_v49 = vrot.slane %v1011_v36, 5 }
  0x90   : > { %v1160_v48 = vrot.slane %v1158_v31, 4  ;;  %v1715_v53 = vrot.slane %v1713_v35, 4  ;;  %v1716_v54 = vrot.slane %v1574_v42, 6  ;;  %v1579_v59 = vld [vmem:[%s3348_s30 + $0x94] sm:$0xf] }
  0x91   : > { %2578 = vmatmul.mubr.msk.bf16.gmra.mrb[20].mxu1 %vm695_vm10, %v2942_v58  ;;  %2626 = vmatmul.mubr.msk.bf16.vlgmr.msra.gmra.mrb[0].mxu0 %vm695_vm10, %v2463_v61  ;;  %v1003_v58 = vld [vmem:[%s3348_s30 + $0x78] sm:$0xe]  ;;  %v2468_v61 = vcombine.low %v1686_v45, %v1689_v46  ;;  %v1154_v45 = vrot.slane %v1008_v29, 5  ;;  %v2408_v46 = vrot.slane %v1009_v30, 9  ;;  %v1577_v62 = vld [vmem:[%s3348_s30 + $0x8c] sm:$0x3] }
  0x92   : > { %2581 = vmatprep.mubr.msk.bf16.mxu1 %vm695_vm10, %v2943_v1  ;;  %2629 = vmatprep.mubr.msk.bf16.mxu0 %vm695_vm10, %v2464_v2  ;;  %v1570_v1 = vld [vmem:[%s3348_s30 + $0x70] sm:$0xf]  ;;  %v2421_v2 = vcombine.low %v1131_v51, %v1134_v52  ;;  %v2406_v8 = vrot.slane %v1003_v58, 9  ;;  %v1013_v51 = vld [vmem:[%s3348_s30 + $0xa0] sm:$0xf]  ;;  %v2455_v52 = vrot.slane %v1572_v41, 10  ;;  %v1162_v3 = vsel %vm3343_vm11, %v1160_v48, %v1161_v49 }
  0x93   : > { %v1706_v14 = vrot.slane %v1570_v1, 6  ;;  %v1575_v58 = vld [vmem:[%s3348_s30 + $0x84] sm:$0xc]  ;;  %v1012_v0 = vld [vmem:[%s3348_s30 + $0x9c] sm:$0xe]  ;;  %v1165_v1 = vrot.slane %v1013_v51, 5 }
  0x94   : > { %v1145_v27 = vsel %vm3343_vm11, %v2406_v8, %v1144_v4  ;;  %v1016_v4 = vld [vmem:[%s3348_s30 + $0xac] sm:$0xf]  ;;  %v1014_v5 = vld [vmem:[%s3348_s30 + $0xa4] sm:$0x1]  ;;  %v1714_v7 = vsel %vm3431_vm13, %v2455_v52, %v1713_v35  ;;  %v1717_v8 = vsel %vm3431_vm13, %v1715_v53, %v1716_v54  ;;  %v1017_v12 = vld [vmem:[%s3348_s30 + $0xb0] sm:$0x1] }
  0x95   : > { %v1707_v56 = vsel %vm3431_vm13, %v2454_v33, %v1706_v14  ;;  %v1172_v6 = vrot.slane %v1016_v4, 5  ;;  %v1723_v15 = vrot.slane %v1577_v62, 6  ;;  %v2409_v16 = vrot.slane %v1012_v0, 9  ;;  %v1578_v17 = vld [vmem:[%s3348_s30 + $0x90] sm:$0xc] }
  0x96   : > { %v1580_v18 = vld [vmem:[%s3348_s30 + $0x98] sm:$0x3]  ;;  %v1167_v21 = vrot.slane %v1165_v1, 4  ;;  %v1168_v22 = vrot.slane %v1014_v5, 5  ;;  %v2457_v29 = vrot.slane %v1578_v17, 10 }
  0x97   : > { %v1174_v25 = vrot.slane %v1172_v6, 4  ;;  %v1582_v32 = vld [vmem:[%s3348_s30 + $0xa0] sm:$0xf]  ;;  %v1166_v36 = vsel %vm3343_vm11, %v2409_v16, %v1165_v1  ;;  %v1018_v42 = vld [vmem:[%s3348_s30 + $0xb4] sm:$0xe] }
  0x98   : > { %v1734_v41 = vrot.slane %v1582_v32, 6  ;;  %v1584_v51 = vld [vmem:[%s3348_s30 + $0xa8] sm:$0xc]  ;;  %v1586_v52 = vld [vmem:[%s3348_s30 + $0xb0] sm:$0x3]  ;;  %v2411_v54 = vrot.slane %v1018_v42, 9 }
  0x99   : > { %2582 = vmatmul.mubr.msk.bf16.gmra.mrb[24].mxu1 %vm695_vm10, %v2944_v24  ;;  %2630 = vmatmul.mubr.msk.bf16.gmra.mrb[4].mxu0 %vm695_vm10, %v2465_v23  ;;  %v1006_v23 = vld [vmem:[%s3348_s30 + $0x84] sm:$0xe]  ;;  %v1151_v24 = vrot.slane %v1007_v11, 5  ;;  %v1015_v11 = vld [vmem:[%s3348_s30 + $0xa8] sm:$0xe] }
  0x9a   : > { %2585 = vmatprep.mubr.msk.bf16.mxu1 %vm695_vm10, %v2945_v28  ;;  %2633 = vmatprep.mubr.msk.bf16.mxu0 %vm695_vm10, %v2466_v34  ;;  %v1148_v28 = vsel %vm3343_vm11, %v1146_v9, %v1147_v10  ;;  %v1708_v34 = vrot.slane %v1706_v14, 4  ;;  %v2407_v40 = vrot.slane %v1006_v23, 9  ;;  %v2456_v9 = vrot.slane %v1575_v58, 10  ;;  %v1588_v0 = vld [vmem:[%s3348_s30 + $0xb8] sm:$0xf] }
  0x9b   : > { %v2423_v43 = vcombine.low %v1145_v27, %v1148_v28  ;;  %v1153_v44 = vrot.slane %v1151_v24, 4  ;;  %v1727_v10 = vrot.slane %v1579_v59, 6  ;;  %v2472_v23 = vcombine.low %v1714_v7, %v1717_v8  ;;  %v1019_v28 = vld [vmem:[%s3348_s30 + $0xb8] sm:$0xf] }
  0x9c   : > { %v1710_v57 = vsel %vm3431_vm13, %v1708_v34, %v1709_v39  ;;  %v1175_v27 = vrot.slane %v1017_v12, 5  ;;  %v1585_v34 = vld [vmem:[%s3348_s30 + $0xac] sm:$0xf]  ;;  %v1736_v59 = vrot.slane %v1734_v41, 4 }
  0x9d   : > { %v2471_v13 = vcombine.low %v1707_v56, %v1710_v57  ;;  %v1729_v30 = vrot.slane %v1727_v10, 4  ;;  %v1741_v48 = vrot.slane %v1585_v34, 6 }
  0x9f   : > { %v1743_v62 = vrot.slane %v1741_v48, 4 }
  0xa1   : > { %2586 = vmatmul.mubr.msk.bf16.gmra.mrb[28].mxu1 %vm695_vm10, %v2946_v50  ;;  %2634 = vmatmul.mubr.msk.bf16.gmra.mrb[8].mxu0 %vm695_vm10, %v2467_v60  ;;  %v1576_v50 = vld [vmem:[%s3348_s30 + $0x88] sm:$0xf]  ;;  %v1152_v60 = vsel %vm3343_vm11, %v2407_v40, %v1151_v24  ;;  %v2410_v24 = vrot.slane %v1015_v11, 9  ;;  %v1176_v40 = vsel %vm3343_vm11, %v1174_v25, %v1175_v27 }
  0xa2   : > { %2607 = vmatprep.mubr.msk.bf16.mxu1 %vm695_vm10, %v2421_v2  ;;  %2637 = vmatprep.mubr.msk.bf16.mxu0 %vm695_vm10, %v2468_v61  ;;  %v1155_v61 = vsel %vm3343_vm11, %v1153_v44, %v1154_v45  ;;  %v1720_v63 = vrot.slane %v1576_v50, 6  ;;  %v1159_v2 = vsel %vm3343_vm11, %v2408_v46, %v1158_v31  ;;  %v1730_v31 = vrot.slane %v1580_v18, 6  ;;  %v1581_v46 = vld [vmem:[%s3348_s30 + $0x9c] sm:$0xc] }
  0xa3   : > { %v2424_v14 = vcombine.low %v1152_v60, %v1155_v61  ;;  %v2425_v19 = vcombine.low %v1159_v2, %v1162_v3  ;;  %v1173_v39 = vsel %vm3343_vm11, %v2410_v24, %v1172_v6  ;;  %v1728_v44 = vsel %vm3431_vm13, %v2457_v29, %v1727_v10  ;;  %v1589_v10 = vld [vmem:[%s3348_s30 + $0xbc] sm:$0x3] }
  0xa4   : > { %v1722_v20 = vrot.slane %v1720_v63, 4  ;;  %v1721_v33 = vsel %vm3431_vm13, %v2456_v9, %v1720_v63  ;;  %v1731_v45 = vsel %vm3431_vm13, %v1729_v30, %v1730_v31  ;;  %v2427_v53 = vcombine.low %v1173_v39, %v1176_v40  ;;  %v1587_v9 = vld [vmem:[%s3348_s30 + $0xb4] sm:$0xc]  ;;  %v583_v39 = vld [vmem:[#allocation3 + $0x8] sm:$0xff] }
  0xa5   : > { %v2474_v57 = vcombine.low %v1728_v44, %v1731_v45  ;;  %v2458_v58 = vrot.slane %v1581_v46, 10  ;;  %v2459_v61 = vrot.slane %v1584_v51, 10  ;;  %v1744_v63 = vrot.slane %v1586_v52, 6  ;;  %v586_v52 = vld [vmem:[#allocation3 + $0x20] sm:$0xff] }
  0xa6   : > { %v1724_v35 = vsel %vm3431_vm13, %v1722_v20, %v1723_v15  ;;  %v1748_v6 = vrot.slane %v1588_v0, 6  ;;  %v1751_v15 = vrot.slane %v1589_v10, 6 }
  0xa7   : > { %v2473_v49 = vcombine.low %v1721_v33, %v1724_v35  ;;  %v1735_v3 = vsel %vm3431_vm13, %v2458_v58, %v1734_v41  ;;  %v1742_v7 = vsel %vm3431_vm13, %v2459_v61, %v1741_v48  ;;  %v1745_v8 = vsel %vm3431_vm13, %v1743_v62, %v1744_v63  ;;  %v584_v35 = vld [vmem:[#allocation3 + $0x10] sm:$0xff] }
  0xa8   : > { %v2476_v12 = vcombine.low %v1742_v7, %v1745_v8  ;;  %v591_v8 = vld [vmem:[#allocation3 + $0x48] sm:$0xff] }
  0xa9   : > { %2608 = vmatmul.mubr.msk.bf16.vlgmr.msra.gmra.mrb[16].mxu1 %vm695_vm10, %v2422_v38  ;;  %2638 = vmatmul.mubr.msk.bf16.gmra.mrb[12].mxu0 %vm695_vm10, %v2469_v37  ;;  %v1169_v37 = vsel %vm3343_vm11, %v1167_v21, %v1168_v22  ;;  %v1179_v38 = vrot.slane %v1019_v28, 5 }
  0xaa   : > { %2611 = vmatprep.mubr.msk.bf16.mxu1 %vm695_vm10, %v2423_v43  ;;  %2641 = vmatprep.mubr.msk.bf16.mxu0 %vm695_vm10, %v2470_v47  ;;  %v1020_v43 = vld [vmem:[%s3348_s30 + $0xbc] sm:$0x1]  ;;  %v1583_v47 = vld [vmem:[%s3348_s30 + $0xa4] sm:$0x3]  ;;  %v2426_v50 = vcombine.low %v1166_v36, %v1169_v37  ;;  %v582_v36 = vld [vmem:[#allocation3] sm:$0xff] }
  0xab   : > { %v1181_v4 = vrot.slane %v1179_v38, 4  ;;  %v1182_v56 = vrot.slane %v1020_v43, 5  ;;  %v1737_v60 = vrot.slane %v1583_v47, 6  ;;  %v1180_v1 = vsel %vm3343_vm11, %v2411_v54, %v1179_v38  ;;  %v585_v37 = vld [vmem:[#allocation3 + $0x18] sm:$0xff] }
  0xad   : > { %v1183_v2 = vsel %vm3343_vm11, %v1181_v4, %v1182_v56  ;;  %v1738_v5 = vsel %vm3431_vm13, %v1736_v59, %v1737_v60  ;;  %v587_v4 = vld [vmem:[#allocation3 + $0x28] sm:$0xff] }
  0xae   : > { %v2428_v11 = vcombine.low %v1180_v1, %v1183_v2  ;;  %v2475_v55 = vcombine.low %v1735_v3, %v1738_v5  ;;  %v592_v2 = vld [vmem:[#allocation3 + $0x50] sm:$0xff]  ;;  %v590_v5 = vld [vmem:[#allocation3 + $0x40] sm:$0xff] }
  0xb1   : > { %2612 = vmatmul.mubr.msk.bf16.gmra.mrb[20].mxu1 %vm695_vm10, %v2424_v14  ;;  %2642 = vmatmul.mubr.msk.bf16.gmra.mrb[16].mxu0 %vm695_vm10, %v2471_v13  ;;  %v2460_v13 = vrot.slane %v1587_v9, 10  ;;  %v1750_v14 = vrot.slane %v1748_v6, 4 }
  0xb2   : > { %2615 = vmatprep.mubr.msk.bf16.mxu1 %vm695_vm10, %v2425_v19  ;;  %2645 = vmatprep.mubr.msk.bf16.mxu0 %vm695_vm10, %v2472_v23 }
  0xb3   : > { %v1749_v16 = vsel %vm3431_vm13, %v2460_v13, %v1748_v6  ;;  %v1752_v17 = vsel %vm3431_vm13, %v1750_v14, %v1751_v15  ;;  %v593_v6 = vld [vmem:[#allocation3 + $0x58] sm:$0xff] }
  0xb4   : > { %v2477_v18 = vcombine.low %v1749_v16, %v1752_v17 }
  0xb9   : > { %2616 = vmatmul.mubr.msk.bf16.gmra.mrb[24].mxu1 %vm695_vm10, %v2426_v50  ;;  %2646 = vmatmul.mubr.msk.bf16.gmra.mrb[20].mxu0 %vm695_vm10, %v2473_v49  ;;  %v588_v50 = vld [vmem:[#allocation3 + $0x30] sm:$0xff] }
  0xba   : > { %2619 = vmatprep.mubr.msk.bf16.mxu1 %vm695_vm10, %v2427_v53  ;;  %2649 = vmatprep.mubr.msk.bf16.mxu0 %vm695_vm10, %v2474_v57  ;;  %v589_v53 = vld [vmem:[#allocation3 + $0x38] sm:$0xff] }
  0xc1   : > { %2620 = vmatmul.mubr.msk.bf16.gmra.mrb[28].mxu1 %vm695_vm10, %v2428_v11  ;;  %2650 = vmatmul.mubr.msk.bf16.gmra.mrb[24].mxu0 %vm695_vm10, %v2475_v55 }
  0xc2   : > { %2653 = vmatprep.mubr.msk.bf16.mxu0 %vm695_vm10, %v2476_v12 }
  0xc9   : > { %2654 = vmatmul.mubr.msk.bf16.gmra.mrb[28].mxu0 %vm695_vm10, %v2477_v18  ;;  %v596_v18 = vld [vmem:[#allocation3 + $0x70] sm:$0xff] }
 0x13c   : > { %v2559_v19 = vpop.f32.mrb[0].mxu1 }
 0x13d   : > { %v782_v20 = vpop.f32.mrb[1].mxu1  ;;  %v911_v38 = vadd.f32 %v2559_v19, %v584_v35 }
 0x13e   : > { %v2560_v21 = vpop.f32.mrb[2].mxu1  ;;  %v909_v40 = vadd.f32 %v782_v20, %v582_v36  ;;  %v594_v20 = vld [vmem:[#allocation3 + $0x60] sm:$0xff] }
 0x13f   : > { %v785_v22 = vpop.f32.mrb[3].mxu1  ;;  %v912_v42 = vadd.f32 %v2560_v21, %v585_v37  ;;  %v597_v21 = vld [vmem:[#allocation3 + $0x78] sm:$0xff] }
 0x140   : > { %v910_v45 = vadd.f32 %v785_v22, %v583_v39 }
 0x144   : > { %v2563_v23 = vpop.f32.mrb[4].mxu1 }
 0x145   : > { %v798_v24 = vpop.f32.mrb[5].mxu1  ;;  %v915_v54 = vadd.f32 %v2563_v23, %v588_v50  ;;  %v595_v23 = vld [vmem:[#allocation3 + $0x68] sm:$0xff] }
 0x146   : > { %v2564_v25 = vpop.f32.mrb[6].mxu1  ;;  %v913_v56 = vadd.f32 %v798_v24, %v586_v52 }
 0x147   : > { %v801_v27 = vpop.f32.mrb[7].mxu1  ;;  %v916_v58 = vadd.f32 %v2564_v25, %v589_v53 }
 0x148   : > { %v914_v61 = vadd.f32 %v801_v27, %v587_v4 }
 0x14c   : > { %v2567_v28 = vpop.f32.mrb[8].mxu1 }
 0x14d   : > { %v814_v29 = vpop.f32.mrb[9].mxu1  ;;  %v919_v7 = vadd.f32 %v2567_v28, %v592_v2 }
 0x14e   : > { %v2568_v30 = vpop.f32.mrb[10].mxu1  ;;  %v917_v9 = vadd.f32 %v814_v29, %v590_v5 }
 0x14f   : > { %v817_v31 = vpop.f32.mrb[11].mxu1  ;;  %v920_v11 = vadd.f32 %v2568_v30, %v593_v6 }
 0x150   : > { %v918_v13 = vadd.f32 %v817_v31, %v591_v8 }
 0x154   : > { %v3646_v32 = vpop.f32.mrb[12].mxu1 }
 0x155   : > { %v3648_v33 = vpop.f32.mrb[13].mxu1  ;;  %v923_v22 = vadd.f32 %v3646_v32, %v596_v18  ;;  %v600_v32 = vld [vmem:[#allocation3 + $0x90] sm:$0xff] }
 0x156   : > { %v3650_v26 = vpop.f32.mrb[14].mxu1  ;;  %v921_v25 = vadd.f32 %v3648_v33, %v594_v20  ;;  %v598_v33 = vld [vmem:[#allocation3 + $0x80] sm:$0xff] }
 0x157   : > { %v3652_v34 = vpop.f32.mrb[15].mxu1  ;;  %v924_v29 = vadd.f32 %v3650_v26, %v597_v21  ;;  %v599_v26 = vld [vmem:[#allocation3 + $0x88] sm:$0xff] }
 0x158   : > { %v922_v36 = vadd.f32 %v3652_v34, %v595_v23 }
 0x164   : > { %v2627_v41 = vpop.f32.mrb[0].mxu0 }
 0x165   : > { %v2662_v43 = vadd.f32 %v2627_v41, %v911_v38  ;;  %v1920_v44 = vpop.f32.mrb[1].mxu0 }
 0x166   : > { %v2666_v46 = vadd.f32 %v1920_v44, %v909_v40  ;;  %v2628_v47 = vpop.f32.mrb[2].mxu0 }
 0x167   : > { %2081 = vst [vmem:[#allocation3 + $0x10] sm:$0xff] %v2662_v43  ;;  %v2670_v48 = vadd.f32 %v2628_v47, %v912_v42  ;;  %v1923_v49 = vpop.f32.mrb[3].mxu0  ;;  %v601_v43 = vld [vmem:[#allocation3 + $0x98] sm:$0xff] }
 0x168   : > { %2079 = vst [vmem:[#allocation3] sm:$0xff] %v2666_v46  ;;  %v2674_v51 = vadd.f32 %v1923_v49, %v910_v45 }
 0x169   : > { %2082 = vst [vmem:[#allocation3 + $0x18] sm:$0xff] %v2670_v48 }
 0x16a   : > { %2080 = vst [vmem:[#allocation3 + $0x8] sm:$0xff] %v2674_v51 }
 0x16c   : > { %v2631_v57 = vpop.f32.mrb[4].mxu0 }
 0x16d   : > { %v2678_v59 = vadd.f32 %v2631_v57, %v915_v54  ;;  %v1936_v60 = vpop.f32.mrb[5].mxu0 }
 0x16e   : > { %v2682_v62 = vadd.f32 %v1936_v60, %v913_v56  ;;  %v2632_v63 = vpop.f32.mrb[6].mxu0  ;;  %v602_v60 = vld [vmem:[#allocation3 + $0xa0] sm:$0xff] }
 0x16f   : > { %2085 = vst [vmem:[#allocation3 + $0x30] sm:$0xff] %v2678_v59  ;;  %v2686_v0 = vadd.f32 %v2632_v63, %v916_v58  ;;  %v1939_v1 = vpop.f32.mrb[7].mxu0  ;;  %v604_v58 = vld [vmem:[#allocation3 + $0xb0] sm:$0xff]  ;;  %v603_v63 = vld [vmem:[#allocation3 + $0xa8] sm:$0xff] }
 0x170   : > { %2083 = vst [vmem:[#allocation3 + $0x20] sm:$0xff] %v2682_v62  ;;  %v2690_v3 = vadd.f32 %v1939_v1, %v914_v61  ;;  %v605_v61 = vld [vmem:[#allocation3 + $0xb8] sm:$0xff] }
 0x171   : > { %2086 = vst [vmem:[#allocation3 + $0x38] sm:$0xff] %v2686_v0 }
 0x172   : > { %2084 = vst [vmem:[#allocation3 + $0x28] sm:$0xff] %v2690_v3 }
 0x174   : > { %v2635_v10 = vpop.f32.mrb[8].mxu0 }
 0x175   : > { %v2694_v55 = vadd.f32 %v2635_v10, %v919_v7  ;;  %v1952_v12 = vpop.f32.mrb[9].mxu0 }
 0x176   : > { %v2698_v14 = vadd.f32 %v1952_v12, %v917_v9  ;;  %v2636_v15 = vpop.f32.mrb[10].mxu0 }
 0x177   : > { %2089 = vst [vmem:[#allocation3 + $0x50] sm:$0xff] %v2694_v55  ;;  %v2702_v16 = vadd.f32 %v2636_v15, %v920_v11  ;;  %v1955_v17 = vpop.f32.mrb[11].mxu0 }
 0x178   : > { %2087 = vst [vmem:[#allocation3 + $0x40] sm:$0xff] %v2698_v14  ;;  %v2706_v19 = vadd.f32 %v1955_v17, %v918_v13  ;;  %v608_v14 = vld [vmem:[#allocation3 + $0xd0] sm:$0xff]  ;;  %v609_v17 = vld [vmem:[#allocation3 + $0xd8] sm:$0xff] }
 0x179   : > { %2090 = vst [vmem:[#allocation3 + $0x58] sm:$0xff] %v2702_v16  ;;  %v606_v16 = vld [vmem:[#allocation3 + $0xc0] sm:$0xff] }
 0x17a   : > { %2088 = vst [vmem:[#allocation3 + $0x48] sm:$0xff] %v2706_v19  ;;  %v607_v19 = vld [vmem:[#allocation3 + $0xc8] sm:$0xff] }
 0x17c   : > { %v2609_v24 = vpop.f32.mrb[16].mxu1  ;;  %v2639_v27 = vpop.f32.mrb[12].mxu0 }
 0x17d   : > { %v1415_v28 = vpop.f32.mrb[17].mxu1  ;;  %v2710_v30 = vadd.f32 %v2639_v27, %v923_v22  ;;  %v1968_v31 = vpop.f32.mrb[13].mxu0  ;;  %v2725_v44 = vadd.f32 %v2609_v24, %v600_v32 }
 0x17e   : > { %v2610_v35 = vpop.f32.mrb[18].mxu1  ;;  %v2714_v37 = vadd.f32 %v1968_v31, %v921_v25  ;;  %v2640_v38 = vpop.f32.mrb[14].mxu0  ;;  %v2731_v46 = vadd.f32 %v1415_v28, %v598_v33 }
 0x17f   : > { %v1418_v39 = vpop.f32.mrb[19].mxu1  ;;  %2093 = vst [vmem:[#allocation3 + $0x70] sm:$0xff] %v2710_v30  ;;  %v2718_v40 = vadd.f32 %v2640_v38, %v924_v29  ;;  %v1971_v41 = vpop.f32.mrb[15].mxu0  ;;  %v2737_v34 = vadd.f32 %v2610_v35, %v601_v43  ;;  %v612_v38 = vld [vmem:[#allocation3 + $0xf0] sm:$0xff] }
 0x180   : > { %2091 = vst [vmem:[#allocation3 + $0x60] sm:$0xff] %v2714_v37  ;;  %v2722_v42 = vadd.f32 %v1971_v41, %v922_v36  ;;  %v2743_v52 = vadd.f32 %v1418_v39, %v599_v26  ;;  %v613_v41 = vld [vmem:[#allocation3 + $0xf8] sm:$0xff] }
 0x181   : > { %2094 = vst [vmem:[#allocation3 + $0x78] sm:$0xff] %v2718_v40  ;;  %v610_v40 = vld [vmem:[#allocation3 + $0xe0] sm:$0xff] }
 0x182   : > { %2092 = vst [vmem:[#allocation3 + $0x68] sm:$0xff] %v2722_v42  ;;  %v611_v42 = vld [vmem:[#allocation3 + $0xe8] sm:$0xff] }
 0x184   : > { %v2613_v45 = vpop.f32.mrb[20].mxu1  ;;  %v2643_v47 = vpop.f32.mrb[16].mxu0 }
 0x185   : > { %v1431_v48 = vpop.f32.mrb[21].mxu1  ;;  %v2728_v49 = vadd.f32 %v2725_v44, %v2643_v47  ;;  %v1984_v50 = vpop.f32.mrb[17].mxu0  ;;  %v2749_v62 = vadd.f32 %v2613_v45, %v604_v58  ;;  %v2119_v58 = vld [vmem:[#allocation3 + $0x20] sm:$0xff] (!%p2494_p1) }
 0x186   : > { %v2614_v51 = vpop.f32.mrb[22].mxu1  ;;  %v2734_v53 = vadd.f32 %v2731_v46, %v1984_v50  ;;  %v2644_v54 = vpop.f32.mrb[18].mxu0  ;;  %v2755_v1 = vadd.f32 %v1431_v48, %v602_v60 }
 0x187   : > { %v1434_v4 = vpop.f32.mrb[23].mxu1  ;;  %2097 = vst [vmem:[#allocation3 + $0x90] sm:$0xff] %v2728_v49  ;;  %v2740_v56 = vadd.f32 %v2737_v34, %v2644_v54  ;;  %v1987_v57 = vpop.f32.mrb[19].mxu0  ;;  %v2761_v5 = vadd.f32 %v2614_v51, %v605_v61  ;;  %v2115_v51 = vld [vmem:[#allocation3] sm:$0xff] (!%p2494_p1) }
 0x188   : > { %2095 = vst [vmem:[#allocation3 + $0x80] sm:$0xff] %v2734_v53  ;;  %v2746_v59 = vadd.f32 %v2743_v52, %v1987_v57  ;;  %v2767_v9 = vadd.f32 %v1434_v4, %v603_v63  ;;  %v3662_v52 = vld [vmem:[%s3793_s2] ss:$0 sm:$0xff] (!%p2494_p1)  ;;  %v2116_v53 = vld [vmem:[#allocation3 + $0x8] sm:$0xff] (!%p2494_p1)  ;;  %v2118_v57 = vld [vmem:[#allocation3 + $0x18] sm:$0xff] (!%p2494_p1) }
 0x189   : > { %2098 = vst [vmem:[#allocation3 + $0x98] sm:$0xff] %v2740_v56  ;;  %v2154_v54 = vadd.f32 (!%p2494_p1), %v3662_v52, %v2115_v51  ;;  %v2155_v4 = vadd.f32 (!%p2494_p1), %v3662_v52, %v2116_v53  ;;  %v2117_v56 = vld [vmem:[#allocation3 + $0x10] sm:$0xff] (!%p2494_p1)  ;;  %v2157_v60 = vadd.f32 (!%p2494_p1), %v3662_v52, %v2118_v57  ;;  %v2158_v61 = vadd.f32 (!%p2494_p1), %v3662_v52, %v2119_v58 }
 0x18a   : > { %2096 = vst [vmem:[#allocation3 + $0x88] sm:$0xff] %v2746_v59  ;;  %v2156_v59 = vadd.f32 (!%p2494_p1), %v3662_v52, %v2117_v56  ;;  %v2121_v63 = vld [vmem:[#allocation3 + $0x30] sm:$0xff] (!%p2494_p1) }
 0x18c   : > { %v2617_v0 = vpop.f32.mrb[24].mxu1  ;;  %v2647_v2 = vpop.f32.mrb[20].mxu0 }
 0x18d   : > { %v1447_v3 = vpop.f32.mrb[25].mxu1  ;;  %v2752_v6 = vadd.f32 %v2749_v62, %v2647_v2  ;;  %v2000_v7 = vpop.f32.mrb[21].mxu0  ;;  %v2773_v18 = vadd.f32 %v2617_v0, %v608_v14  ;;  %v2120_v62 = vld [vmem:[#allocation3 + $0x28] sm:$0xff] (!%p2494_p1)  ;;  %v2122_v0 = vld [vmem:[#allocation3 + $0x38] sm:$0xff] (!%p2494_p1)  ;;  %v2187_v2 = vmax.f32 (!%p2494_p1), %v2155_v4, 0.0 }
 0x18e   : > { %v2618_v8 = vpop.f32.mrb[26].mxu1  ;;  %v2758_v10 = vadd.f32 %v2755_v1, %v2000_v7  ;;  %v2648_v11 = vpop.f32.mrb[22].mxu0  ;;  %v2779_v21 = vadd.f32 %v1447_v3, %v606_v16  ;;  %v2186_v1 = vmax.f32 (!%p2494_p1), %v2154_v54, 0.0  ;;  %v2159_v3 = vadd.f32 (!%p2494_p1), %v3662_v52, %v2120_v62  ;;  %v2124_v7 = vld [vmem:[#allocation3 + $0x48] sm:$0xff] (!%p2494_p1) }
 0x18f   : > { %v1450_v55 = vpop.f32.mrb[27].mxu1  ;;  %2101 = vst [vmem:[#allocation3 + $0xb0] sm:$0xff] %v2752_v6  ;;  %v2764_v12 = vadd.f32 %v2761_v5, %v2648_v11  ;;  %v2003_v13 = vpop.f32.mrb[23].mxu0  ;;  %v2785_v24 = vadd.f32 %v2618_v8, %v609_v17  ;;  %v2160_v5 = vadd.f32 (!%p2494_p1), %v3662_v52, %v2121_v63  ;;  %v2123_v6 = vld [vmem:[#allocation3 + $0x40] sm:$0xff] (!%p2494_p1)  ;;  %v2125_v8 = vld [vmem:[#allocation3 + $0x50] sm:$0xff] (!%p2494_p1)  ;;  %v2190_v11 = vmax.f32 (!%p2494_p1), %v2158_v61, 0.0 }
 0x190   : > { %2099 = vst [vmem:[#allocation3 + $0xa0] sm:$0xff] %v2758_v10  ;;  %v2770_v15 = vadd.f32 %v2767_v9, %v2003_v13  ;;  %v2791_v29 = vadd.f32 %v1450_v55, %v607_v19  ;;  %v2188_v9 = vmax.f32 (!%p2494_p1), %v2156_v59, 0.0  ;;  %v2189_v10 = vmax.f32 (!%p2494_p1), %v2157_v60, 0.0  ;;  %v2127_v13 = vld [vmem:[#allocation3 + $0x60] sm:$0xff] (!%p2494_p1)  ;;  %v2128_v14 = vld [vmem:[#allocation3 + $0x68] sm:$0xff] (!%p2494_p1)  ;;  %2218 = vst [vmem:[%s3154_s26] sm:$0xff] (!%p2494_p1), %v2186_v1 }
 0x191   : > { %2102 = vst [vmem:[#allocation3 + $0xb8] sm:$0xff] %v2764_v12  ;;  %v2161_v55 = vadd.f32 (!%p2494_p1), %v3662_v52, %v2122_v0  ;;  %v2126_v12 = vld [vmem:[#allocation3 + $0x58] sm:$0xff] (!%p2494_p1)  ;;  %2219 = vst [vmem:[%s3154_s26 + $0x8] sm:$0xff] (!%p2494_p1), %v2187_v2  ;;  %v2192_v16 = vmax.f32 (!%p2494_p1), %v2160_v5, 0.0  ;;  %v2162_v17 = vadd.f32 (!%p2494_p1), %v3662_v52, %v2123_v6  ;;  %v2129_v19 = vld [vmem:[#allocation3 + $0x70] sm:$0xff] (!%p2494_p1) }
 0x192   : > { %2100 = vst [vmem:[#allocation3 + $0xa8] sm:$0xff] %v2770_v15  ;;  %v2191_v15 = vmax.f32 (!%p2494_p1), %v2159_v3, 0.0  ;;  %2220 = vst [vmem:[%s3154_s26 + $0x10] sm:$0xff] (!%p2494_p1), %v2188_v9 }
 0x193   : > { %2221 = vst [vmem:[%s3154_s26 + $0x18] sm:$0xff] (!%p2494_p1), %v2189_v10  ;;  %2222 = vst [vmem:[%s3154_s26 + $0x20] sm:$0xff] (!%p2494_p1), %v2190_v11 }
 0x194   : > { %v2621_v20 = vpop.f32.mrb[28].mxu1  ;;  %v2651_v22 = vpop.f32.mrb[24].mxu0  ;;  %2223 = vst [vmem:[%s3154_s26 + $0x28] sm:$0xff] (!%p2494_p1), %v2191_v15  ;;  %2224 = vst [vmem:[%s3154_s26 + $0x30] sm:$0xff] (!%p2494_p1), %v2192_v16 }
 0x195   : > { %v1463_v23 = vpop.f32.mrb[29].mxu1  ;;  %v2776_v25 = vadd.f32 %v2773_v18, %v2651_v22  ;;  %v2016_v27 = vpop.f32.mrb[25].mxu0  ;;  %v2797_v32 = vadd.f32 %v2621_v20, %v612_v38  ;;  %v2163_v18 = vadd.f32 (!%p2494_p1), %v3662_v52, %v2124_v7  ;;  %v2130_v20 = vld [vmem:[#allocation3 + $0x78] sm:$0xff] (!%p2494_p1)  ;;  %v2164_v22 = vadd.f32 (!%p2494_p1), %v3662_v52, %v2125_v8 }
 0x196   : > { %v2622_v28 = vpop.f32.mrb[30].mxu1  ;;  %v2782_v30 = vadd.f32 %v2779_v21, %v2016_v27  ;;  %v2652_v31 = vpop.f32.mrb[26].mxu0  ;;  %v2803_v33 = vadd.f32 %v1463_v23, %v610_v40  ;;  %v2193_v21 = vmax.f32 (!%p2494_p1), %v2161_v55, 0.0  ;;  %v2165_v23 = vadd.f32 (!%p2494_p1), %v3662_v52, %v2126_v12  ;;  %v2132_v27 = vld [vmem:[#allocation3 + $0x88] sm:$0xff] (!%p2494_p1) }
 0x197   : > { %v1466_v35 = vpop.f32.mrb[31].mxu1  ;;  %2105 = vst [vmem:[#allocation3 + $0xd0] sm:$0xff] %v2776_v25  ;;  %v2788_v36 = vadd.f32 %v2785_v24, %v2652_v31  ;;  %v2019_v37 = vpop.f32.mrb[27].mxu0  ;;  %v2809_v44 = vadd.f32 %v2622_v28, %v613_v41  ;;  %v2166_v24 = vadd.f32 (!%p2494_p1), %v3662_v52, %v2127_v13  ;;  %v2131_v25 = vld [vmem:[#allocation3 + $0x80] sm:$0xff] (!%p2494_p1)  ;;  %v2194_v28 = vmax.f32 (!%p2494_p1), %v2162_v17, 0.0 }
 0x198   : > { %2103 = vst [vmem:[#allocation3 + $0xc0] sm:$0xff] %v2782_v30  ;;  %v2794_v39 = vadd.f32 %v2791_v29, %v2019_v37  ;;  %v2815_v46 = vadd.f32 %v1466_v35, %v611_v42  ;;  %v2195_v29 = vmax.f32 (!%p2494_p1), %v2163_v18, 0.0  ;;  %v2167_v30 = vadd.f32 (!%p2494_p1), %v3662_v52, %v2128_v14  ;;  %v2133_v35 = vld [vmem:[#allocation3 + $0x90] sm:$0xff] (!%p2494_p1)  ;;  %v2135_v37 = vld [vmem:[#allocation3 + $0xa0] sm:$0xff] (!%p2494_p1)  ;;  %2225 = vst [vmem:[%s3154_s26 + $0x38] sm:$0xff] (!%p2494_p1), %v2193_v21 }
 0x199   : > { %2106 = vst [vmem:[#allocation3 + $0xd8] sm:$0xff] %v2788_v36  ;;  %v2168_v31 = vadd.f32 (!%p2494_p1), %v3662_v52, %v2129_v19  ;;  %v2134_v36 = vld [vmem:[#allocation3 + $0x98] sm:$0xff] (!%p2494_p1)  ;;  %v2196_v38 = vmax.f32 (!%p2494_p1), %v2164_v22, 0.0  ;;  %v2198_v40 = vmax.f32 (!%p2494_p1), %v2166_v24, 0.0  ;;  %v2169_v41 = vadd.f32 (!%p2494_p1), %v3662_v52, %v2130_v20  ;;  %v2137_v42 = vld [vmem:[#allocation3 + $0xb0] sm:$0xff] (!%p2494_p1)  ;;  %2226 = vst [vmem:[%s3154_s26 + $0x40] sm:$0xff] (!%p2494_p1), %v2194_v28 }
 0x19a   : > { %2104 = vst [vmem:[#allocation3 + $0xc8] sm:$0xff] %v2794_v39  ;;  %v2197_v39 = vmax.f32 (!%p2494_p1), %v2165_v23, 0.0  ;;  %2227 = vst [vmem:[%s3154_s26 + $0x48] sm:$0xff] (!%p2494_p1), %v2195_v29  ;;  %v2176_v4 = vadd.f32 (!%p2494_p1), %v3662_v52, %v2137_v42 }
 0x19b   : > { %2228 = vst [vmem:[%s3154_s26 + $0x50] sm:$0xff] (!%p2494_p1), %v2196_v38  ;;  %2230 = vst [vmem:[%s3154_s26 + $0x60] sm:$0xff] (!%p2494_p1), %v2198_v40 }
 0x19c   : > { %v2655_v43 = vpop.f32.mrb[28].mxu0  ;;  %2114 = sbr.rel (%p2494_p1) target bundleno = 431 (0x1af), region = 40  ;;  %2229 = vst [vmem:[%s3154_s26 + $0x58] sm:$0xff] (!%p2494_p1), %v2197_v39  ;;  %v2208_v2 = vmax.f32 (!%p2494_p1), %v2176_v4, 0.0 }
 0x19d   : > { %v2800_v26 = vadd.f32 %v2797_v32, %v2655_v43  ;;  %v2032_v45 = vpop.f32.mrb[29].mxu0  ;;  %v2136_v32 = vld [vmem:[#allocation3 + $0xa8] sm:$0xff] (!%p2494_p1)  ;;  %v2200_v43 = vmax.f32 (!%p2494_p1), %v2168_v31, 0.0 }
 0x19e   : > { %v2806_v47 = vadd.f32 %v2803_v33, %v2032_v45  ;;  %v2656_v48 = vpop.f32.mrb[30].mxu0  ;;  %v2199_v33 = vmax.f32 (!%p2494_p1), %v2167_v30, 0.0  ;;  %v2138_v45 = vld [vmem:[#allocation3 + $0xb8] sm:$0xff] (!%p2494_p1)  ;;  %v2175_v54 = vadd.f32 (!%p2494_p1), %v3662_v52, %v2136_v32  ;;  %v2141_v56 = vld [vmem:[#allocation3 + $0xd0] sm:$0xff] (!%p2494_p1)  ;;  %2240 = vst [vmem:[%s3154_s26 + $0xb0] sm:$0xff] (!%p2494_p1), %v2208_v2 }
 0x19f   : > { %2109 = vst [vmem:[#allocation3 + $0xf0] sm:$0xff] %v2800_v26  ;;  %v2812_v34 = vadd.f32 %v2809_v44, %v2656_v48  ;;  %v2035_v49 = vpop.f32.mrb[31].mxu0  ;;  %v2170_v44 = vadd.f32 (!%p2494_p1), %v3662_v52, %v2131_v25  ;;  %v2171_v26 = vadd.f32 (!%p2494_p1), %v3662_v52, %v2132_v27  ;;  %v2173_v48 = vadd.f32 (!%p2494_p1), %v3662_v52, %v2134_v36 }
 0x1a0   : > { %2107 = vst [vmem:[#allocation3 + $0xe0] sm:$0xff] %v2806_v47  ;;  %v2818_v50 = vadd.f32 %v2815_v46, %v2035_v49  ;;  %v2201_v46 = vmax.f32 (!%p2494_p1), %v2169_v41, 0.0  ;;  %v2172_v47 = vadd.f32 (!%p2494_p1), %v3662_v52, %v2133_v35  ;;  %v2139_v49 = vld [vmem:[#allocation3 + $0xc0] sm:$0xff] (!%p2494_p1)  ;;  %2231 = vst [vmem:[%s3154_s26 + $0x68] sm:$0xff] (!%p2494_p1), %v2199_v33  ;;  %v2142_v57 = vld [vmem:[#allocation3 + $0xd8] sm:$0xff] (!%p2494_p1)  ;;  %v2177_v62 = vadd.f32 (!%p2494_p1), %v3662_v52, %v2138_v45 }
 0x1a1   : > { %2110 = vst [vmem:[#allocation3 + $0xf8] sm:$0xff] %v2812_v34  ;;  %v2174_v34 = vadd.f32 (!%p2494_p1), %v3662_v52, %v2135_v37  ;;  %2232 = vst [vmem:[%s3154_s26 + $0x70] sm:$0xff] (!%p2494_p1), %v2200_v43  ;;  %v2202_v51 = vmax.f32 (!%p2494_p1), %v2170_v44, 0.0  ;;  %v2203_v53 = vmax.f32 (!%p2494_p1), %v2171_v26, 0.0  ;;  %v2205_v60 = vmax.f32 (!%p2494_p1), %v2173_v48, 0.0 }
 0x1a2   : > { %2108 = vst [vmem:[#allocation3 + $0xe8] sm:$0xff] %v2818_v50  ;;  %v2140_v50 = vld [vmem:[#allocation3 + $0xc8] sm:$0xff] (!%p2494_p1)  ;;  %2233 = vst [vmem:[%s3154_s26 + $0x78] sm:$0xff] (!%p2494_p1), %v2201_v46  ;;  %v2204_v59 = vmax.f32 (!%p2494_p1), %v2172_v47, 0.0  ;;  %v2207_v1 = vmax.f32 (!%p2494_p1), %v2175_v54, 0.0  ;;  %v2178_v3 = vadd.f32 (!%p2494_p1), %v3662_v52, %v2139_v49  ;;  %v2209_v7 = vmax.f32 (!%p2494_p1), %v2177_v62, 0.0 }
 0x1a3   : > { %v2206_v61 = vmax.f32 %v2174_v34, 0.0  ;;  %2234 = vst [vmem:[%s3154_s26 + $0x80] sm:$0xff] %v2202_v51  ;;  %2235 = vst [vmem:[%s3154_s26 + $0x88] sm:$0xff] %v2203_v53  ;;  %v2179_v5 = vadd.f32 %v3662_v52, %v2140_v50  ;;  %v2180_v8 = vadd.f32 %v3662_v52, %v2141_v56  ;;  %v2181_v9 = vadd.f32 %v3662_v52, %v2142_v57 }
 0x1a4   : > { %2236 = vst [vmem:[%s3154_s26 + $0x90] sm:$0xff] %v2204_v59  ;;  %2237 = vst [vmem:[%s3154_s26 + $0x98] sm:$0xff] %v2205_v60  ;;  %v2210_v11 = vmax.f32 %v2178_v3, 0.0 }
 0x1a5   : > { %2238 = vst [vmem:[%s3154_s26 + $0xa0] sm:$0xff] %v2206_v61  ;;  %2239 = vst [vmem:[%s3154_s26 + $0xa8] sm:$0xff] %v2207_v1  ;;  %v2211_v55 = vmax.f32 %v2179_v5, 0.0  ;;  %v2212_v14 = vmax.f32 %v2180_v8, 0.0  ;;  %v2213_v15 = vmax.f32 %v2181_v9, 0.0 }
 0x1a6   : > { %v2145_v0 = vld [vmem:[#allocation3 + $0xf0] sm:$0xff]  ;;  %2241 = vst [vmem:[%s3154_s26 + $0xb8] sm:$0xff] %v2209_v7  ;;  %2242 = vst [vmem:[%s3154_s26 + $0xc0] sm:$0xff] %v2210_v11 }
 0x1a7   : > { %v2143_v58 = vld [vmem:[#allocation3 + $0xe0] sm:$0xff]  ;;  %v2184_v13 = vadd.f32 %v3662_v52, %v2145_v0  ;;  %2243 = vst [vmem:[%s3154_s26 + $0xc8] sm:$0xff] %v2211_v55  ;;  %2244 = vst [vmem:[%s3154_s26 + $0xd0] sm:$0xff] %v2212_v14 }
 0x1a8   : > { %v2146_v6 = vld [vmem:[#allocation3 + $0xf8] sm:$0xff]  ;;  %v2182_v10 = vadd.f32 %v3662_v52, %v2143_v58  ;;  %2245 = vst [vmem:[%s3154_s26 + $0xd8] sm:$0xff] %v2213_v15 }
 0x1a9   : > { %v2144_v63 = vld [vmem:[#allocation3 + $0xe8] sm:$0xff]  ;;  %v2185_v17 = vadd.f32 %v3662_v52, %v2146_v6  ;;  %v2216_v19 = vmax.f32 %v2184_v13, 0.0 }
 0x1aa   : > { %v2183_v12 = vadd.f32 %v3662_v52, %v2144_v63  ;;  %v2214_v16 = vmax.f32 %v2182_v10, 0.0 }
 0x1ab   : > { %v2217_v20 = vmax.f32 %v2185_v17, 0.0  ;;  %2248 = vst [vmem:[%s3154_s26 + $0xf0] sm:$0xff] %v2216_v19 }
 0x1ac   : > { %v2215_v18 = vmax.f32 %v2183_v12, 0.0  ;;  %2246 = vst [vmem:[%s3154_s26 + $0xe0] sm:$0xff] %v2214_v16 }
 0x1ad   : > { %2249 = vst [vmem:[%s3154_s26 + $0xf8] sm:$0xff] %v2217_v20 }
 0x1ae   : > { %2247 = vst [vmem:[%s3154_s26 + $0xe8] sm:$0xff] %v2215_v18 }
 0x1af PF: > { %s2503_s15 = sshll.u32 %s3029_s16, 12  ;;  %s2264_s9 = sshll.u32 %s3154_s26, 4  ;;  %s3735_s9 = int_to_ptr.vmem [resolvable:$true] %s2264_s9 }
 0x1b0   : > { %s3732_s8 = scalar_lea.hbm %s3794_s3, %s2503_s15  ;;  %s3739_s10 = scalar_lea.sflag [#allocation5], %s188_s29 }
 0x1b1   : > { %s2947_s11 = scalar_lea.vmem %s3735_s9, 4096  ;;  %s3045_s16 = smov [#allocation4]  }
 0x1b2   : > { %p2948_p2 = scmp.ne.s32.totalorder %s3735_s9, %s2947_s11  ;;  %s2951_s20 = sshll.u32 %s3045_s16, 4  ;;  %s2952_s20 = int_to_ptr.vmem [resolvable:$false] %s2951_s20 }
 0x1b3   : > { %s2953_s21 = scalar_lea.vmem %s2952_s20, 8192  ;;  %p2954_p6 = scmp.lt.s32.totalorder %s3735_s9, %s2952_s20 }
 0x1b4   : > { %p2949_p4 = pnand %p2948_p2, %p3117_p3  ;;  %p2955_p7 = scmp.lt.s32.totalorder %s2953_s21, %s2947_s11 }
 0x1b6   : > { %p2950_p5 = pneg %p2949_p4  ;;  %p2956_p8 = por %p2955_p7, %p2954_p6 }
 0x1b8   : > { %p2957_p10 = pnand %p2956_p8, %p2950_p5 }
 0x1ba   : > { %2960 = shalt.err (!%p2957_p10)
}
 0x1bb   : > { %s2961_s29 = scalar_lea.hbm %s3732_s8, 4096  ;;  %s2965_s30 = scalar_lea.hbm %s3794_s3, 8192 }
 0x1bc   : > { %p2962_p11 = scmp.ne.s32.totalorder %s3732_s8, %s2961_s29  ;;  %p2966_p0 = scmp.lt.u32.totalorder %s3732_s8, %s3794_s3 }
 0x1bd   : > { %p2967_p1 = scmp.lt.u32.totalorder %s2965_s30, %s2961_s29  ;;  %p2969_p4 = scmp.lt.u32.totalorder %s2961_s29, %s3732_s8 }
 0x1be   : > { %p2963_p12 = pnand %p2962_p11, %p3117_p3 }
 0x1bf   : > { %p2968_p2 = por %p2967_p1, %p2966_p0 }
 0x1c0   : > { %p2964_p13 = pneg %p2963_p12 }
 0x1c1   : > { %p2970_p5 = por %p2969_p4, %p2968_p2 }
 0x1c3   : > { %p2971_p6 = pnand %p2970_p5, %p2964_p13 }
 0x1c5   : > { %2974 = shalt.err (!%p2971_p6)
}
 0x1c6   : > { %s3046_s15 = smov 128   ;;  %s3047_s6 = smov 8  }
 0x1c7   : > { %2856 = dma.vmem_to_hbm [thread:$0]  (%p3117_p3), %s3735_s9, 4096, %s3732_s8, %s3739_s10, %s3046_s15, %s3046_s15, %s3047_s6  }
 0x1c8 PF: > { %p2862_p7 = scmp.ge.s32.totalorder %s3041_s19, 2  ;;  %s2279_s7 = sand.u32 1, %s3013_s12  }
 0x1c9   : > { %s2280_s11 = scalar_lea.sflag [#allocation5], %s2279_s7 }
 0x1ca   : > { %p2859_p8 = pnand %p2862_p7, %p3127_p9 }
 0x1cc   : > { %3008 = dma.done.wait (!%p2859_p8), %s2280_s11, 4096  }
 0x1cd   : > { %3010 = vsyncadd (!%p2859_p8), %s2280_s11, 4294963200  ;;  %s16_s19 = sadd.s32 1, %s3041_s19   ;;  %s3803_s12 = smov %s3017_s13 }
 0x1ce   : > { %p13_p10 = scmp.ge.s32.totalorder %s16_s19, 8   ;;  %s3804_s13 = smov %s3021_s14 }
 0x1cf   : > { %s3805_s14 = smov %s3135_s28  ;;  %s3806_s15 = smov %s3033_s17 }
 0x1d0   : > { %s3807_s16 = smov %s3037_s18  ;;  %s3808_s17 = smov %s3811_s22 }
 0x1d1   : > { %s3809_s18 = smov %s3815_s23  ;;  %15 = sbr.rel (!%p13_p10) target bundleno = 5 (0x5), region = 82 }
 0x1d8   :  { %2285 = vsyncpa [#allocation5], 1 }
 0x1d9   :  { %2287 = vsyncpa [#allocation5 + $0x1], 1 }

</bundles_post_ra>
